<compile_context>
chip_gen: v7x
topology: tpu7x:2x2x1
jax: 0.10.0
libtpu: 0.0.40
codegen_flags: <defaults>
</compile_context>

<pallas_src>
import math
from functools import partial

import jax
import jax.numpy as jnp
from jax.experimental import pallas as pl
from jax.experimental.pallas import tpu as pltpu

BN_EPS = 1e-3


def _round_up(x, m):
    return (x + m - 1) // m * m


# --------------------------------------------------------------------------------------
# Kernel 1: tiled im2col GEMM (bf16 in, f32 acc) + per-row-tile BN partial statistics.
# --------------------------------------------------------------------------------------
def _gemm_stats_kernel(p_ref, w_ref, y_ref, stats_ref, acc_ref):
    """p_ref:(TR,TK) bf16, w_ref:(TK,Cp) bf16, y_ref:(TR,Cp) f32,
    stats_ref:(1,8,Cp) f32 (row0=colsum, row1=colsumsq), acc_ref:(TR,Cp) f32 scratch."""
    k = pl.program_id(1)

    @pl.when(k == 0)
    def _init():
        acc_ref[...] = jnp.zeros_like(acc_ref)

    acc_ref[...] += jnp.dot(p_ref[...], w_ref[...], preferred_element_type=jnp.float32)

    @pl.when(k == pl.num_programs(1) - 1)
    def _finalize():
        y = acc_ref[...]
        y_ref[...] = y
        s = jnp.sum(y, axis=0, keepdims=True)           # (1, Cp)
        sq = jnp.sum(y * y, axis=0, keepdims=True)      # (1, Cp)
        rows = jax.lax.broadcasted_iota(jnp.int32, (8, y.shape[1]), 0)
        stats = jnp.where(rows == 0, s, jnp.where(rows == 1, sq, 0.0))
        stats_ref[...] = stats[None, :, :]


# --------------------------------------------------------------------------------------
# Kernel 2: lane-dense BN-affine + ReLU epilogue (single FMA + max per element).
# --------------------------------------------------------------------------------------
def _affine_relu_kernel(y_ref, scale_ref, shift_ref, o_ref):
    o_ref[...] = jnp.maximum(y_ref[...] * scale_ref[...] + shift_ref[...], 0.0)


# --------------------------------------------------------------------------------------
# One Conv2d(3,3,stride,pad=1,bias=False) + BatchNorm2d(train) + ReLU layer (NHWC in/out).
# --------------------------------------------------------------------------------------
def conv3x3_bn_relu(x_nhwc, w_hwio, gamma, beta, stride):
    N, H, W, Cin = x_nhwc.shape
    Cout = w_hwio.shape[-1]
    Hout = (H - 1) // stride + 1
    Wout = (W - 1) // stride + 1
    R = N * Hout * Wout
    K = 9 * Cin

    # ---- glue: spatial pad + im2col gather (pure indexing), bf16 MXU inputs ----
    xp = jnp.pad(x_nhwc, ((0, 0), (1, 1), (1, 1), (0, 0)))
    cols = []
    for kh in range(3):
        for kw in range(3):
            cols.append(xp[:,
                           kh: kh + stride * (Hout - 1) + 1: stride,
                           kw: kw + stride * (Wout - 1) + 1: stride,
                           :])
    patches = jnp.stack(cols, axis=3).reshape(R, K).astype(jnp.bfloat16)
    w2d = w_hwio.reshape(K, Cout).astype(jnp.bfloat16)

    # ---- tiling / padding: lane-dense Cout, 8-aligned row tiles, 128-aligned K tiles ----
    Cp = _round_up(Cout, 128)
    TR = min(512, _round_up(R, 8))
    Rp = _round_up(R, TR)
    num_r = Rp // TR
    Kp0 = _round_up(K, 128)
    num_k = pl.cdiv(Kp0, 1024)
    TK = _round_up(-(-Kp0 // num_k), 128)
    Kp = TK * num_k

    p_pad = jnp.zeros((Rp, Kp), jnp.bfloat16).at[:R, :K].set(patches)
    w_pad = jnp.zeros((Kp, Cp), jnp.bfloat16).at[:K, :Cout].set(w2d)

    # ---- pass 1: tiled GEMM + partial BN sums ----
    y2d, stats = pl.pallas_call(
        _gemm_stats_kernel,
        out_shape=(jax.ShapeDtypeStruct((Rp, Cp), jnp.float32),
                   jax.ShapeDtypeStruct((num_r, 8, Cp), jnp.float32)),
        grid_spec=pltpu.PrefetchScalarGridSpec(
            num_scalar_prefetch=0,
            grid=(num_r, num_k),
            in_specs=[
                pl.BlockSpec((TR, TK), lambda i, k: (i, k)),
                pl.BlockSpec((TK, Cp), lambda i, k: (k, 0)),
            ],
            out_specs=[
                pl.BlockSpec((TR, Cp), lambda i, k: (i, 0)),
                pl.BlockSpec((1, 8, Cp), lambda i, k: (i, 0, 0)),
            ],
            scratch_shapes=[pltpu.VMEM((TR, Cp), jnp.float32)],
        ),
        compiler_params=pltpu.CompilerParams(
            dimension_semantics=("parallel", "arbitrary"),
            vmem_limit_bytes=32 * 1024 * 1024,
        ),
        cost_estimate=pl.CostEstimate(
            flops=2 * Rp * Kp * Cp,
            transcendentals=0,
            bytes_accessed=Rp * Kp * 2 + num_r * Kp * Cp * 2 + Rp * Cp * 4 + num_r * 8 * Cp * 4,
        ),
    )(p_pad, w_pad)

    # ---- fold batch stats (biased var over N*H*W rows) into per-channel scale/shift ----
    tot = jnp.sum(stats[:, 0, :], axis=0)      # padded rows contribute exact zeros
    tot_sq = jnp.sum(stats[:, 1, :], axis=0)
    mean = tot / float(R)
    var = jnp.maximum(tot_sq / float(R) - mean * mean, 0.0)
    inv_std = jax.lax.rsqrt(var + BN_EPS)
    gamma_p = jnp.ones((Cp,), jnp.float32).at[:Cout].set(gamma)
    beta_p = jnp.zeros((Cp,), jnp.float32).at[:Cout].set(beta)
    scale = (gamma_p * inv_std).reshape(1, Cp)
    shift = (beta_p - mean * gamma_p * inv_std).reshape(1, Cp)

    # ---- pass 2: lane-dense normalize + ReLU ----
    out2d = pl.pallas_call(
        _affine_relu_kernel,
        out_shape=jax.ShapeDtypeStruct((Rp, Cp), jnp.float32),
        grid_spec=pltpu.PrefetchScalarGridSpec(
            num_scalar_prefetch=0,
            grid=(num_r,),
            in_specs=[
                pl.BlockSpec((TR, Cp), lambda i: (i, 0)),
                pl.BlockSpec((1, Cp), lambda i: (0, 0)),
                pl.BlockSpec((1, Cp), lambda i: (0, 0)),
            ],
            out_specs=pl.BlockSpec((TR, Cp), lambda i: (i, 0)),
        ),
        compiler_params=pltpu.CompilerParams(
            dimension_semantics=("parallel",),
            vmem_limit_bytes=32 * 1024 * 1024,
        ),
        cost_estimate=pl.CostEstimate(
            flops=2 * Rp * Cp,
            transcendentals=0,
            bytes_accessed=2 * Rp * Cp * 4 + 2 * Cp * 4,
        ),
    )(y2d, scale, shift)

    return out2d[:R, :Cout].reshape(N, Hout, Wout, Cout)


# --------------------------------------------------------------------------------------
# Parameter init matching the PyTorch __init__ (kaiming_normal_ fan_out / relu; BN affine).
# --------------------------------------------------------------------------------------
def init_fpn_params(key, in_channel, out_channels, layer_nums):
    params = []
    c_in = in_channel
    for i, c_out in enumerate(out_channels):
        stage = []
        for j in range(layer_nums[i] + 1):  # 1 strided conv + layer_nums[i] stride-1 convs
            cin = c_in if j == 0 else c_out
            key, sub = jax.random.split(key)
            std = math.sqrt(2.0 / (c_out * 3 * 3))
            w = jax.random.normal(sub, (3, 3, cin, c_out), jnp.float32) * std
            gamma = jnp.ones((c_out,), jnp.float32)
            beta = jnp.zeros((c_out,), jnp.float32)
            stage.append((w, gamma, beta))
        c_in = c_out
        params.append(stage)
    return params


def fpn_encoder_forward(x_nchw, params, layer_strides):
    """Reproduces FPNEncoder.forward: returns a list of per-stage NCHW outputs."""
    x = jnp.transpose(x_nchw, (0, 2, 3, 1)).astype(jnp.float32)  # NCHW -> NHWC
    outs = []
    for stage_params, stride in zip(params, layer_strides):
        for j, (w, gamma, beta) in enumerate(stage_params):
            s = stride if j == 0 else 1
            x = conv3x3_bn_relu(x, w, gamma, beta, s)
        outs.append(jnp.transpose(x, (0, 3, 1, 2)))  # back to NCHW
    return outs


if __name__ == "__main__":
    in_channel = 4
    out_channels = [8, 16, 32]
    layer_nums = [1, 1, 1]
    layer_strides = [2, 2, 2]

    key = jax.random.PRNGKey(0)
    key, xkey = jax.random.split(key)
    x = jax.random.normal(xkey, (2, in_channel, 16, 16), jnp.float32)  # NCHW

    params = init_fpn_params(key, in_channel, out_channels, layer_nums)

    fwd = jax.jit(partial(fpn_encoder_forward, layer_strides=tuple(layer_strides)))
    outs = fwd(x, params)
    outs = [jax.block_until_ready(o) for o in outs]

    expected = [(2, 8, 8, 8), (2, 16, 4, 4), (2, 32, 2, 2)]
    assert [tuple(o.shape) for o in outs] == expected, [o.shape for o in outs]
    assert all(bool(jnp.all(jnp.isfinite(o))) for o in outs)

    print("KERNEL_OK")
</pallas_src>

<mosaic_0001>
module attributes {stable_mosaic.version = 11 : i64} {
  func.func @_gemm_stats_kernel(%arg0: i32, %arg1: i32, %arg2: memref<128x128xbf16, #tpu.memory_space<vmem>>, %arg3: memref<128x128xbf16, #tpu.memory_space<vmem>>, %arg4: memref<128x128xf32, #tpu.memory_space<vmem>>, %arg5: memref<1x8x128xf32, #tpu.memory_space<vmem>>, %arg6: memref<128x128xf32, #tpu.memory_space<vmem>>) attributes {dimension_semantics = [#tpu.dimension_semantics<parallel>, #tpu.dimension_semantics<arbitrary>], iteration_bounds = array<i64: 1, 1>, scalar_prefetch = 0 : i64, scratch_operands = 1 : i64, tpu.core_type = #tpu.core_type<tc>, window_params = [{transform_indices = @transform_0, window_bounds = array<i64: 128, 128>}, {transform_indices = @transform_1, window_bounds = array<i64: 128, 128>}, {transform_indices = @transform_2, window_bounds = array<i64: 128, 128>}, {transform_indices = @transform_3, window_bounds = array<i64: 1, 8, 128>}]} {
    %c0_i32 = arith.constant 0 : i32
    %0 = arith.cmpi eq, %arg1, %c0_i32 : i32
    %1 = arith.extui %0 : i1 to i32
    %c0_i32_0 = arith.constant 0 : i32
    %2 = arith.cmpi ne, %1, %c0_i32_0 : i32
    scf.if %2 {
      %cst_10 = arith.constant 0.000000e+00 : f32
      %12 = vector.broadcast %cst_10 : f32 to vector<128x128xf32>
      %c0_11 = arith.constant 0 : index
      %c0_12 = arith.constant 0 : index
      %13 = vector.load %arg6[%c0_11, %c0_12] : memref<128x128xf32, #tpu.memory_space<vmem>>, vector<128x128xf32>
      tpu.vector_store %arg6[%c0_11, %c0_12], %12 {strides = array<i32>} : memref<128x128xf32, #tpu.memory_space<vmem>>, vector<128x128xf32>,
    } else {
    }
    %c0 = arith.constant 0 : index
    %c0_1 = arith.constant 0 : index
    %3 = vector.load %arg6[%c0, %c0_1] : memref<128x128xf32, #tpu.memory_space<vmem>>, vector<128x128xf32>
    %c0_2 = arith.constant 0 : index
    %c0_3 = arith.constant 0 : index
    %4 = vector.load %arg2[%c0_2, %c0_3] : memref<128x128xbf16, #tpu.memory_space<vmem>>, vector<128x128xbf16>
    %c0_4 = arith.constant 0 : index
    %c0_5 = arith.constant 0 : index
    %5 = vector.load %arg3[%c0_4, %c0_5] : memref<128x128xbf16, #tpu.memory_space<vmem>>, vector<128x128xbf16>
    %cst = arith.constant dense<0.000000e+00> : vector<128x128xf32>
    %6 = tpu.matmul %4, %5, %cst {dimension_numbers = #tpu.dot_dimension_numbers<[1], [0], [0], [1], [0, 0, 1, 1], [], []>} : vector<128x128xbf16>, vector<128x128xbf16>, vector<128x128xf32> -> vector<128x128xf32>
    %7 = arith.addf %3, %6 : vector<128x128xf32>
    %c0_6 = arith.constant 0 : index
    %c0_7 = arith.constant 0 : index
    %8 = vector.load %arg6[%c0_6, %c0_7] : memref<128x128xf32, #tpu.memory_space<vmem>>, vector<128x128xf32>
    tpu.vector_store %arg6[%c0_6, %c0_7], %7 {strides = array<i32>} : memref<128x128xf32, #tpu.memory_space<vmem>>, vector<128x128xf32>,
    %c0_i32_8 = arith.constant 0 : i32
    %9 = arith.cmpi eq, %arg1, %c0_i32_8 : i32
    %10 = arith.extui %9 : i1 to i32
    %c0_i32_9 = arith.constant 0 : i32
    %11 = arith.cmpi ne, %10, %c0_i32_9 : i32
    scf.if %11 {
      %c0_10 = arith.constant 0 : index
      %c0_11 = arith.constant 0 : index
      %12 = vector.load %arg6[%c0_10, %c0_11] : memref<128x128xf32, #tpu.memory_space<vmem>>, vector<128x128xf32>
      %c0_12 = arith.constant 0 : index
      %c0_13 = arith.constant 0 : index
      %13 = vector.load %arg4[%c0_12, %c0_13] : memref<128x128xf32, #tpu.memory_space<vmem>>, vector<128x128xf32>
      tpu.vector_store %arg4[%c0_12, %c0_13], %12 {strides = array<i32>} : memref<128x128xf32, #tpu.memory_space<vmem>>, vector<128x128xf32>,
      %cst_14 = arith.constant dense<0.000000e+00> : vector<128xf32>
      %14 = vector.multi_reduction <add>, %12, %cst_14 [0] : vector<128x128xf32> to vector<128xf32>
      %15 = vector.shape_cast %14 : vector<128xf32> to vector<1x128xf32>
      %16 = arith.mulf %12, %12 : vector<128x128xf32>
      %cst_15 = arith.constant dense<0.000000e+00> : vector<128xf32>
      %17 = vector.multi_reduction <add>, %16, %cst_15 [0] : vector<128x128xf32> to vector<128xf32>
      %18 = vector.shape_cast %17 : vector<128xf32> to vector<1x128xf32>
      %19 = tpu.iota {dimensions = array<i32: 0>} : vector<8x128xi32>
      %c0_i32_16 = arith.constant 0 : i32
      %20 = vector.broadcast %c0_i32_16 : i32 to vector<8x128xi32>
      %21 = arith.cmpi eq, %19, %20 : vector<8x128xi32>
      %c1_i32 = arith.constant 1 : i32
      %22 = vector.broadcast %c1_i32 : i32 to vector<8x128xi32>
      %23 = arith.cmpi eq, %19, %22 : vector<8x128xi32>
      %cst_17 = arith.constant 0.000000e+00 : f32
      %24 = vector.shape_cast %18 : vector<1x128xf32> to vector<1x128xf32>
      %25 = vector.broadcast %24 : vector<1x128xf32> to vector<8x128xf32>
      %26 = vector.broadcast %cst_17 : f32 to vector<8x128xf32>
      %27 = arith.select %23, %25, %26 : vector<8x128xi1>, vector<8x128xf32>
      %28 = vector.shape_cast %15 : vector<1x128xf32> to vector<1x128xf32>
      %29 = vector.broadcast %28 : vector<1x128xf32> to vector<8x128xf32>
      %30 = arith.select %21, %29, %27 : vector<8x128xi1>, vector<8x128xf32>
      %31 = vector.shape_cast %30 : vector<8x128xf32> to vector<1x8x128xf32>
      %c0_18 = arith.constant 0 : index
      %c0_19 = arith.constant 0 : index
      %c0_20 = arith.constant 0 : index
      %32 = vector.load %arg5[%c0_18, %c0_19, %c0_20] : memref<1x8x128xf32, #tpu.memory_space<vmem>>, vector<1x8x128xf32>
      tpu.vector_store %arg5[%c0_18, %c0_19, %c0_20], %31 {strides = array<i32>} : memref<1x8x128xf32, #tpu.memory_space<vmem>>, vector<1x8x128xf32>,
    } else {
    }
    return
  }
  func.func @transform_0(%arg0: i32, %arg1: i32) -> (i32, i32) {
    %c0_i32 = arith.constant 0 : i32
    return %arg0, %arg1 : i32, i32
  }
  func.func @transform_1(%arg0: i32, %arg1: i32) -> (i32, i32) {
    %c0_i32 = arith.constant 0 : i32
    %c0_i32_0 = arith.constant 0 : i32
    return %arg1, %c0_i32 : i32, i32
  }
  func.func @transform_2(%arg0: i32, %arg1: i32) -> (i32, i32) {
    %c0_i32 = arith.constant 0 : i32
    %c0_i32_0 = arith.constant 0 : i32
    return %arg0, %c0_i32 : i32, i32
  }
  func.func @transform_3(%arg0: i32, %arg1: i32) -> (i32, i32, i32) {
    %c0_i32 = arith.constant 0 : i32
    %c0_i32_0 = arith.constant 0 : i32
    %c0_i32_1 = arith.constant 0 : i32
    return %arg0, %c0_i32, %c0_i32_0 : i32, i32, i32
  }
}

module attributes {stable_mosaic.version = 11 : i64} {
  func.func @_affine_relu_kernel(%arg0: i32, %arg1: memref<128x128xf32, #tpu.memory_space<vmem>>, %arg2: memref<1x128xf32, #tpu.memory_space<vmem>>, %arg3: memref<1x128xf32, #tpu.memory_space<vmem>>, %arg4: memref<128x128xf32, #tpu.memory_space<vmem>>) attributes {dimension_semantics = [#tpu.dimension_semantics<parallel>], iteration_bounds = array<i64: 1>, scalar_prefetch = 0 : i64, scratch_operands = 0 : i64, tpu.core_type = #tpu.core_type<tc>, window_params = [{transform_indices = @transform_0, window_bounds = array<i64: 128, 128>}, {pipeline_mode = #tpu.pipeline_mode<synchronous>, transform_indices = @transform_1, window_bounds = array<i64: 1, 128>}, {pipeline_mode = #tpu.pipeline_mode<synchronous>, transform_indices = @transform_2, window_bounds = array<i64: 1, 128>}, {transform_indices = @transform_3, window_bounds = array<i64: 128, 128>}]} {
    %c0 = arith.constant 0 : index
    %c0_0 = arith.constant 0 : index
    %0 = vector.load %arg1[%c0, %c0_0] : memref<128x128xf32, #tpu.memory_space<vmem>>, vector<128x128xf32>
    %c0_1 = arith.constant 0 : index
    %c0_2 = arith.constant 0 : index
    %1 = vector.load %arg2[%c0_1, %c0_2] : memref<1x128xf32, #tpu.memory_space<vmem>>, vector<1x128xf32>
    %2 = vector.broadcast %1 : vector<1x128xf32> to vector<128x128xf32>
    %3 = arith.mulf %0, %2 : vector<128x128xf32>
    %c0_3 = arith.constant 0 : index
    %c0_4 = arith.constant 0 : index
    %4 = vector.load %arg3[%c0_3, %c0_4] : memref<1x128xf32, #tpu.memory_space<vmem>>, vector<1x128xf32>
    %5 = vector.broadcast %4 : vector<1x128xf32> to vector<128x128xf32>
    %6 = arith.addf %3, %5 : vector<128x128xf32>
    %cst = arith.constant 0.000000e+00 : f32
    %7 = vector.broadcast %cst : f32 to vector<128x128xf32>
    %8 = arith.maximumf %6, %7 : vector<128x128xf32>
    %c0_5 = arith.constant 0 : index
    %c0_6 = arith.constant 0 : index
    %9 = vector.load %arg4[%c0_5, %c0_6] : memref<128x128xf32, #tpu.memory_space<vmem>>, vector<128x128xf32>
    tpu.vector_store %arg4[%c0_5, %c0_6], %8 {strides = array<i32>} : memref<128x128xf32, #tpu.memory_space<vmem>>, vector<128x128xf32>,
    return
  }
  func.func @transform_0(%arg0: i32) -> (i32, i32) {
    %c0_i32 = arith.constant 0 : i32
    %c0_i32_0 = arith.constant 0 : i32
    return %arg0, %c0_i32 : i32, i32
  }
  func.func @transform_1(%arg0: i32) -> (i32, i32) {
    %c0_i32 = arith.constant 0 : i32
    %c0_i32_0 = arith.constant 0 : i32
    %c0_i32_1 = arith.constant 0 : i32
    return %c0_i32, %c0_i32_0 : i32, i32
  }
  func.func @transform_2(%arg0: i32) -> (i32, i32) {
    %c0_i32 = arith.constant 0 : i32
    %c0_i32_0 = arith.constant 0 : i32
    %c0_i32_1 = arith.constant 0 : i32
    return %c0_i32, %c0_i32_0 : i32, i32
  }
  func.func @transform_3(%arg0: i32) -> (i32, i32) {
    %c0_i32 = arith.constant 0 : i32
    %c0_i32_0 = arith.constant 0 : i32
    return %arg0, %c0_i32 : i32, i32
  }
}

module attributes {stable_mosaic.version = 11 : i64} {
  func.func @_affine_relu_kernel(%arg0: i32, %arg1: memref<32x128xf32, #tpu.memory_space<vmem>>, %arg2: memref<1x128xf32, #tpu.memory_space<vmem>>, %arg3: memref<1x128xf32, #tpu.memory_space<vmem>>, %arg4: memref<32x128xf32, #tpu.memory_space<vmem>>) attributes {dimension_semantics = [#tpu.dimension_semantics<parallel>], iteration_bounds = array<i64: 1>, scalar_prefetch = 0 : i64, scratch_operands = 0 : i64, tpu.core_type = #tpu.core_type<tc>, window_params = [{transform_indices = @transform_0, window_bounds = array<i64: 32, 128>}, {pipeline_mode = #tpu.pipeline_mode<synchronous>, transform_indices = @transform_1, window_bounds = array<i64: 1, 128>}, {pipeline_mode = #tpu.pipeline_mode<synchronous>, transform_indices = @transform_2, window_bounds = array<i64: 1, 128>}, {transform_indices = @transform_3, window_bounds = array<i64: 32, 128>}]} {
    %c0 = arith.constant 0 : index
    %c0_0 = arith.constant 0 : index
    %0 = vector.load %arg1[%c0, %c0_0] : memref<32x128xf32, #tpu.memory_space<vmem>>, vector<32x128xf32>
    %c0_1 = arith.constant 0 : index
    %c0_2 = arith.constant 0 : index
    %1 = vector.load %arg2[%c0_1, %c0_2] : memref<1x128xf32, #tpu.memory_space<vmem>>, vector<1x128xf32>
    %2 = vector.broadcast %1 : vector<1x128xf32> to vector<32x128xf32>
    %3 = arith.mulf %0, %2 : vector<32x128xf32>
    %c0_3 = arith.constant 0 : index
    %c0_4 = arith.constant 0 : index
    %4 = vector.load %arg3[%c0_3, %c0_4] : memref<1x128xf32, #tpu.memory_space<vmem>>, vector<1x128xf32>
    %5 = vector.broadcast %4 : vector<1x128xf32> to vector<32x128xf32>
    %6 = arith.addf %3, %5 : vector<32x128xf32>
    %cst = arith.constant 0.000000e+00 : f32
    %7 = vector.broadcast %cst : f32 to vector<32x128xf32>
    %8 = arith.maximumf %6, %7 : vector<32x128xf32>
    %c0_5 = arith.constant 0 : index
    %c0_6 = arith.constant 0 : index
    %9 = vector.load %arg4[%c0_5, %c0_6] : memref<32x128xf32, #tpu.memory_space<vmem>>, vector<32x128xf32>
    tpu.vector_store %arg4[%c0_5, %c0_6], %8 {strides = array<i32>} : memref<32x128xf32, #tpu.memory_space<vmem>>, vector<32x128xf32>,
    return
  }
  func.func @transform_0(%arg0: i32) -> (i32, i32) {
    %c0_i32 = arith.constant 0 : i32
    %c0_i32_0 = arith.constant 0 : i32
    return %arg0, %c0_i32 : i32, i32
  }
  func.func @transform_1(%arg0: i32) -> (i32, i32) {
    %c0_i32 = arith.constant 0 : i32
    %c0_i32_0 = arith.constant 0 : i32
    %c0_i32_1 = arith.constant 0 : i32
    return %c0_i32, %c0_i32_0 : i32, i32
  }
  func.func @transform_2(%arg0: i32) -> (i32, i32) {
    %c0_i32 = arith.constant 0 : i32
    %c0_i32_0 = arith.constant 0 : i32
    %c0_i32_1 = arith.constant 0 : i32
    return %c0_i32, %c0_i32_0 : i32, i32
  }
  func.func @transform_3(%arg0: i32) -> (i32, i32) {
    %c0_i32 = arith.constant 0 : i32
    %c0_i32_0 = arith.constant 0 : i32
    return %arg0, %c0_i32 : i32, i32
  }
}

module attributes {stable_mosaic.version = 11 : i64} {
  func.func @_gemm_stats_kernel(%arg0: i32, %arg1: i32, %arg2: memref<32x128xbf16, #tpu.memory_space<vmem>>, %arg3: memref<128x128xbf16, #tpu.memory_space<vmem>>, %arg4: memref<32x128xf32, #tpu.memory_space<vmem>>, %arg5: memref<1x8x128xf32, #tpu.memory_space<vmem>>, %arg6: memref<32x128xf32, #tpu.memory_space<vmem>>) attributes {dimension_semantics = [#tpu.dimension_semantics<parallel>, #tpu.dimension_semantics<arbitrary>], iteration_bounds = array<i64: 1, 1>, scalar_prefetch = 0 : i64, scratch_operands = 1 : i64, tpu.core_type = #tpu.core_type<tc>, window_params = [{transform_indices = @transform_0, window_bounds = array<i64: 32, 128>}, {transform_indices = @transform_1, window_bounds = array<i64: 128, 128>}, {transform_indices = @transform_2, window_bounds = array<i64: 32, 128>}, {transform_indices = @transform_3, window_bounds = array<i64: 1, 8, 128>}]} {
    %c0_i32 = arith.constant 0 : i32
    %0 = arith.cmpi eq, %arg1, %c0_i32 : i32
    %1 = arith.extui %0 : i1 to i32
    %c0_i32_0 = arith.constant 0 : i32
    %2 = arith.cmpi ne, %1, %c0_i32_0 : i32
    scf.if %2 {
      %cst_10 = arith.constant 0.000000e+00 : f32
      %12 = vector.broadcast %cst_10 : f32 to vector<32x128xf32>
      %c0_11 = arith.constant 0 : index
      %c0_12 = arith.constant 0 : index
      %13 = vector.load %arg6[%c0_11, %c0_12] : memref<32x128xf32, #tpu.memory_space<vmem>>, vector<32x128xf32>
      tpu.vector_store %arg6[%c0_11, %c0_12], %12 {strides = array<i32>} : memref<32x128xf32, #tpu.memory_space<vmem>>, vector<32x128xf32>,
    } else {
    }
    %c0 = arith.constant 0 : index
    %c0_1 = arith.constant 0 : index
    %3 = vector.load %arg6[%c0, %c0_1] : memref<32x128xf32, #tpu.memory_space<vmem>>, vector<32x128xf32>
    %c0_2 = arith.constant 0 : index
    %c0_3 = arith.constant 0 : index
    %4 = vector.load %arg2[%c0_2, %c0_3] : memref<32x128xbf16, #tpu.memory_space<vmem>>, vector<32x128xbf16>
    %c0_4 = arith.constant 0 : index
    %c0_5 = arith.constant 0 : index
    %5 = vector.load %arg3[%c0_4, %c0_5] : memref<128x128xbf16, #tpu.memory_space<vmem>>, vector<128x128xbf16>
    %cst = arith.constant dense<0.000000e+00> : vector<32x128xf32>
    %6 = tpu.matmul %4, %5, %cst {dimension_numbers = #tpu.dot_dimension_numbers<[1], [0], [0], [1], [0, 0, 1, 1], [], []>} : vector<32x128xbf16>, vector<128x128xbf16>, vector<32x128xf32> -> vector<32x128xf32>
    %7 = arith.addf %3, %6 : vector<32x128xf32>
    %c0_6 = arith.constant 0 : index
    %c0_7 = arith.constant 0 : index
    %8 = vector.load %arg6[%c0_6, %c0_7] : memref<32x128xf32, #tpu.memory_space<vmem>>, vector<32x128xf32>
    tpu.vector_store %arg6[%c0_6, %c0_7], %7 {strides = array<i32>} : memref<32x128xf32, #tpu.memory_space<vmem>>, vector<32x128xf32>,
    %c0_i32_8 = arith.constant 0 : i32
    %9 = arith.cmpi eq, %arg1, %c0_i32_8 : i32
    %10 = arith.extui %9 : i1 to i32
    %c0_i32_9 = arith.constant 0 : i32
    %11 = arith.cmpi ne, %10, %c0_i32_9 : i32
    scf.if %11 {
      %c0_10 = arith.constant 0 : index
      %c0_11 = arith.constant 0 : index
      %12 = vector.load %arg6[%c0_10, %c0_11] : memref<32x128xf32, #tpu.memory_space<vmem>>, vector<32x128xf32>
      %c0_12 = arith.constant 0 : index
      %c0_13 = arith.constant 0 : index
      %13 = vector.load %arg4[%c0_12, %c0_13] : memref<32x128xf32, #tpu.memory_space<vmem>>, vector<32x128xf32>
      tpu.vector_store %arg4[%c0_12, %c0_13], %12 {strides = array<i32>} : memref<32x128xf32, #tpu.memory_space<vmem>>, vector<32x128xf32>,
      %cst_14 = arith.constant dense<0.000000e+00> : vector<128xf32>
      %14 = vector.multi_reduction <add>, %12, %cst_14 [0] : vector<32x128xf32> to vector<128xf32>
      %15 = vector.shape_cast %14 : vector<128xf32> to vector<1x128xf32>
      %16 = arith.mulf %12, %12 : vector<32x128xf32>
      %cst_15 = arith.constant dense<0.000000e+00> : vector<128xf32>
      %17 = vector.multi_reduction <add>, %16, %cst_15 [0] : vector<32x128xf32> to vector<128xf32>
      %18 = vector.shape_cast %17 : vector<128xf32> to vector<1x128xf32>
      %19 = tpu.iota {dimensions = array<i32: 0>} : vector<8x128xi32>
      %c0_i32_16 = arith.constant 0 : i32
      %20 = vector.broadcast %c0_i32_16 : i32 to vector<8x128xi32>
      %21 = arith.cmpi eq, %19, %20 : vector<8x128xi32>
      %c1_i32 = arith.constant 1 : i32
      %22 = vector.broadcast %c1_i32 : i32 to vector<8x128xi32>
      %23 = arith.cmpi eq, %19, %22 : vector<8x128xi32>
      %cst_17 = arith.constant 0.000000e+00 : f32
      %24 = vector.shape_cast %18 : vector<1x128xf32> to vector<1x128xf32>
      %25 = vector.broadcast %24 : vector<1x128xf32> to vector<8x128xf32>
      %26 = vector.broadcast %cst_17 : f32 to vector<8x128xf32>
      %27 = arith.select %23, %25, %26 : vector<8x128xi1>, vector<8x128xf32>
      %28 = vector.shape_cast %15 : vector<1x128xf32> to vector<1x128xf32>
      %29 = vector.broadcast %28 : vector<1x128xf32> to vector<8x128xf32>
      %30 = arith.select %21, %29, %27 : vector<8x128xi1>, vector<8x128xf32>
      %31 = vector.shape_cast %30 : vector<8x128xf32> to vector<1x8x128xf32>
      %c0_18 = arith.constant 0 : index
      %c0_19 = arith.constant 0 : index
      %c0_20 = arith.constant 0 : index
      %32 = vector.load %arg5[%c0_18, %c0_19, %c0_20] : memref<1x8x128xf32, #tpu.memory_space<vmem>>, vector<1x8x128xf32>
      tpu.vector_store %arg5[%c0_18, %c0_19, %c0_20], %31 {strides = array<i32>} : memref<1x8x128xf32, #tpu.memory_space<vmem>>, vector<1x8x128xf32>,
    } else {
    }
    return
  }
  func.func @transform_0(%arg0: i32, %arg1: i32) -> (i32, i32) {
    %c0_i32 = arith.constant 0 : i32
    return %arg0, %arg1 : i32, i32
  }
  func.func @transform_1(%arg0: i32, %arg1: i32) -> (i32, i32) {
    %c0_i32 = arith.constant 0 : i32
    %c0_i32_0 = arith.constant 0 : i32
    return %arg1, %c0_i32 : i32, i32
  }
  func.func @transform_2(%arg0: i32, %arg1: i32) -> (i32, i32) {
    %c0_i32 = arith.constant 0 : i32
    %c0_i32_0 = arith.constant 0 : i32
    return %arg0, %c0_i32 : i32, i32
  }
  func.func @transform_3(%arg0: i32, %arg1: i32) -> (i32, i32, i32) {
    %c0_i32 = arith.constant 0 : i32
    %c0_i32_0 = arith.constant 0 : i32
    %c0_i32_1 = arith.constant 0 : i32
    return %arg0, %c0_i32, %c0_i32_0 : i32, i32, i32
  }
}

module attributes {stable_mosaic.version = 11 : i64} {
  func.func @_gemm_stats_kernel(%arg0: i32, %arg1: i32, %arg2: memref<32x256xbf16, #tpu.memory_space<vmem>>, %arg3: memref<256x128xbf16, #tpu.memory_space<vmem>>, %arg4: memref<32x128xf32, #tpu.memory_space<vmem>>, %arg5: memref<1x8x128xf32, #tpu.memory_space<vmem>>, %arg6: memref<32x128xf32, #tpu.memory_space<vmem>>) attributes {dimension_semantics = [#tpu.dimension_semantics<parallel>, #tpu.dimension_semantics<arbitrary>], iteration_bounds = array<i64: 1, 1>, scalar_prefetch = 0 : i64, scratch_operands = 1 : i64, tpu.core_type = #tpu.core_type<tc>, window_params = [{transform_indices = @transform_0, window_bounds = array<i64: 32, 256>}, {transform_indices = @transform_1, window_bounds = array<i64: 256, 128>}, {transform_indices = @transform_2, window_bounds = array<i64: 32, 128>}, {transform_indices = @transform_3, window_bounds = array<i64: 1, 8, 128>}]} {
    %c0_i32 = arith.constant 0 : i32
    %0 = arith.cmpi eq, %arg1, %c0_i32 : i32
    %1 = arith.extui %0 : i1 to i32
    %c0_i32_0 = arith.constant 0 : i32
    %2 = arith.cmpi ne, %1, %c0_i32_0 : i32
    scf.if %2 {
      %cst_10 = arith.constant 0.000000e+00 : f32
      %12 = vector.broadcast %cst_10 : f32 to vector<32x128xf32>
      %c0_11 = arith.constant 0 : index
      %c0_12 = arith.constant 0 : index
      %13 = vector.load %arg6[%c0_11, %c0_12] : memref<32x128xf32, #tpu.memory_space<vmem>>, vector<32x128xf32>
      tpu.vector_store %arg6[%c0_11, %c0_12], %12 {strides = array<i32>} : memref<32x128xf32, #tpu.memory_space<vmem>>, vector<32x128xf32>,
    } else {
    }
    %c0 = arith.constant 0 : index
    %c0_1 = arith.constant 0 : index
    %3 = vector.load %arg6[%c0, %c0_1] : memref<32x128xf32, #tpu.memory_space<vmem>>, vector<32x128xf32>
    %c0_2 = arith.constant 0 : index
    %c0_3 = arith.constant 0 : index
    %4 = vector.load %arg2[%c0_2, %c0_3] : memref<32x256xbf16, #tpu.memory_space<vmem>>, vector<32x256xbf16>
    %c0_4 = arith.constant 0 : index
    %c0_5 = arith.constant 0 : index
    %5 = vector.load %arg3[%c0_4, %c0_5] : memref<256x128xbf16, #tpu.memory_space<vmem>>, vector<256x128xbf16>
    %cst = arith.constant dense<0.000000e+00> : vector<32x128xf32>
    %6 = tpu.matmul %4, %5, %cst {dimension_numbers = #tpu.dot_dimension_numbers<[1], [0], [0], [1], [0, 0, 1, 1], [], []>} : vector<32x256xbf16>, vector<256x128xbf16>, vector<32x128xf32> -> vector<32x128xf32>
    %7 = arith.addf %3, %6 : vector<32x128xf32>
    %c0_6 = arith.constant 0 : index
    %c0_7 = arith.constant 0 : index
    %8 = vector.load %arg6[%c0_6, %c0_7] : memref<32x128xf32, #tpu.memory_space<vmem>>, vector<32x128xf32>
    tpu.vector_store %arg6[%c0_6, %c0_7], %7 {strides = array<i32>} : memref<32x128xf32, #tpu.memory_space<vmem>>, vector<32x128xf32>,
    %c0_i32_8 = arith.constant 0 : i32
    %9 = arith.cmpi eq, %arg1, %c0_i32_8 : i32
    %10 = arith.extui %9 : i1 to i32
    %c0_i32_9 = arith.constant 0 : i32
    %11 = arith.cmpi ne, %10, %c0_i32_9 : i32
    scf.if %11 {
      %c0_10 = arith.constant 0 : index
      %c0_11 = arith.constant 0 : index
      %12 = vector.load %arg6[%c0_10, %c0_11] : memref<32x128xf32, #tpu.memory_space<vmem>>, vector<32x128xf32>
      %c0_12 = arith.constant 0 : index
      %c0_13 = arith.constant 0 : index
      %13 = vector.load %arg4[%c0_12, %c0_13] : memref<32x128xf32, #tpu.memory_space<vmem>>, vector<32x128xf32>
      tpu.vector_store %arg4[%c0_12, %c0_13], %12 {strides = array<i32>} : memref<32x128xf32, #tpu.memory_space<vmem>>, vector<32x128xf32>,
      %cst_14 = arith.constant dense<0.000000e+00> : vector<128xf32>
      %14 = vector.multi_reduction <add>, %12, %cst_14 [0] : vector<32x128xf32> to vector<128xf32>
      %15 = vector.shape_cast %14 : vector<128xf32> to vector<1x128xf32>
      %16 = arith.mulf %12, %12 : vector<32x128xf32>
      %cst_15 = arith.constant dense<0.000000e+00> : vector<128xf32>
      %17 = vector.multi_reduction <add>, %16, %cst_15 [0] : vector<32x128xf32> to vector<128xf32>
      %18 = vector.shape_cast %17 : vector<128xf32> to vector<1x128xf32>
      %19 = tpu.iota {dimensions = array<i32: 0>} : vector<8x128xi32>
      %c0_i32_16 = arith.constant 0 : i32
      %20 = vector.broadcast %c0_i32_16 : i32 to vector<8x128xi32>
      %21 = arith.cmpi eq, %19, %20 : vector<8x128xi32>
      %c1_i32 = arith.constant 1 : i32
      %22 = vector.broadcast %c1_i32 : i32 to vector<8x128xi32>
      %23 = arith.cmpi eq, %19, %22 : vector<8x128xi32>
      %cst_17 = arith.constant 0.000000e+00 : f32
      %24 = vector.shape_cast %18 : vector<1x128xf32> to vector<1x128xf32>
      %25 = vector.broadcast %24 : vector<1x128xf32> to vector<8x128xf32>
      %26 = vector.broadcast %cst_17 : f32 to vector<8x128xf32>
      %27 = arith.select %23, %25, %26 : vector<8x128xi1>, vector<8x128xf32>
      %28 = vector.shape_cast %15 : vector<1x128xf32> to vector<1x128xf32>
      %29 = vector.broadcast %28 : vector<1x128xf32> to vector<8x128xf32>
      %30 = arith.select %21, %29, %27 : vector<8x128xi1>, vector<8x128xf32>
      %31 = vector.shape_cast %30 : vector<8x128xf32> to vector<1x8x128xf32>
      %c0_18 = arith.constant 0 : index
      %c0_19 = arith.constant 0 : index
      %c0_20 = arith.constant 0 : index
      %32 = vector.load %arg5[%c0_18, %c0_19, %c0_20] : memref<1x8x128xf32, #tpu.memory_space<vmem>>, vector<1x8x128xf32>
      tpu.vector_store %arg5[%c0_18, %c0_19, %c0_20], %31 {strides = array<i32>} : memref<1x8x128xf32, #tpu.memory_space<vmem>>, vector<1x8x128xf32>,
    } else {
    }
    return
  }
  func.func @transform_0(%arg0: i32, %arg1: i32) -> (i32, i32) {
    %c0_i32 = arith.constant 0 : i32
    return %arg0, %arg1 : i32, i32
  }
  func.func @transform_1(%arg0: i32, %arg1: i32) -> (i32, i32) {
    %c0_i32 = arith.constant 0 : i32
    %c0_i32_0 = arith.constant 0 : i32
    return %arg1, %c0_i32 : i32, i32
  }
  func.func @transform_2(%arg0: i32, %arg1: i32) -> (i32, i32) {
    %c0_i32 = arith.constant 0 : i32
    %c0_i32_0 = arith.constant 0 : i32
    return %arg0, %c0_i32 : i32, i32
  }
  func.func @transform_3(%arg0: i32, %arg1: i32) -> (i32, i32, i32) {
    %c0_i32 = arith.constant 0 : i32
    %c0_i32_0 = arith.constant 0 : i32
    %c0_i32_1 = arith.constant 0 : i32
    return %arg0, %c0_i32, %c0_i32_0 : i32, i32, i32
  }
}

module attributes {stable_mosaic.version = 11 : i64} {
  func.func @_gemm_stats_kernel(%arg0: i32, %arg1: i32, %arg2: memref<8x256xbf16, #tpu.memory_space<vmem>>, %arg3: memref<256x128xbf16, #tpu.memory_space<vmem>>, %arg4: memref<8x128xf32, #tpu.memory_space<vmem>>, %arg5: memref<1x8x128xf32, #tpu.memory_space<vmem>>, %arg6: memref<8x128xf32, #tpu.memory_space<vmem>>) attributes {dimension_semantics = [#tpu.dimension_semantics<parallel>, #tpu.dimension_semantics<arbitrary>], iteration_bounds = array<i64: 1, 1>, scalar_prefetch = 0 : i64, scratch_operands = 1 : i64, tpu.core_type = #tpu.core_type<tc>, window_params = [{transform_indices = @transform_0, window_bounds = array<i64: 8, 256>}, {transform_indices = @transform_1, window_bounds = array<i64: 256, 128>}, {transform_indices = @transform_2, window_bounds = array<i64: 8, 128>}, {transform_indices = @transform_3, window_bounds = array<i64: 1, 8, 128>}]} {
    %c0_i32 = arith.constant 0 : i32
    %0 = arith.cmpi eq, %arg1, %c0_i32 : i32
    %1 = arith.extui %0 : i1 to i32
    %c0_i32_0 = arith.constant 0 : i32
    %2 = arith.cmpi ne, %1, %c0_i32_0 : i32
    scf.if %2 {
      %cst_10 = arith.constant 0.000000e+00 : f32
      %12 = vector.broadcast %cst_10 : f32 to vector<8x128xf32>
      %c0_11 = arith.constant 0 : index
      %c0_12 = arith.constant 0 : index
      %13 = vector.load %arg6[%c0_11, %c0_12] : memref<8x128xf32, #tpu.memory_space<vmem>>, vector<8x128xf32>
      tpu.vector_store %arg6[%c0_11, %c0_12], %12 {strides = array<i32>} : memref<8x128xf32, #tpu.memory_space<vmem>>, vector<8x128xf32>,
    } else {
    }
    %c0 = arith.constant 0 : index
    %c0_1 = arith.constant 0 : index
    %3 = vector.load %arg6[%c0, %c0_1] : memref<8x128xf32, #tpu.memory_space<vmem>>, vector<8x128xf32>
    %c0_2 = arith.constant 0 : index
    %c0_3 = arith.constant 0 : index
    %4 = vector.load %arg2[%c0_2, %c0_3] : memref<8x256xbf16, #tpu.memory_space<vmem>>, vector<8x256xbf16>
    %c0_4 = arith.constant 0 : index
    %c0_5 = arith.constant 0 : index
    %5 = vector.load %arg3[%c0_4, %c0_5] : memref<256x128xbf16, #tpu.memory_space<vmem>>, vector<256x128xbf16>
    %cst = arith.constant dense<0.000000e+00> : vector<8x128xf32>
    %6 = tpu.matmul %4, %5, %cst {dimension_numbers = #tpu.dot_dimension_numbers<[1], [0], [0], [1], [0, 0, 1, 1], [], []>} : vector<8x256xbf16>, vector<256x128xbf16>, vector<8x128xf32> -> vector<8x128xf32>
    %7 = arith.addf %3, %6 : vector<8x128xf32>
    %c0_6 = arith.constant 0 : index
    %c0_7 = arith.constant 0 : index
    %8 = vector.load %arg6[%c0_6, %c0_7] : memref<8x128xf32, #tpu.memory_space<vmem>>, vector<8x128xf32>
    tpu.vector_store %arg6[%c0_6, %c0_7], %7 {strides = array<i32>} : memref<8x128xf32, #tpu.memory_space<vmem>>, vector<8x128xf32>,
    %c0_i32_8 = arith.constant 0 : i32
    %9 = arith.cmpi eq, %arg1, %c0_i32_8 : i32
    %10 = arith.extui %9 : i1 to i32
    %c0_i32_9 = arith.constant 0 : i32
    %11 = arith.cmpi ne, %10, %c0_i32_9 : i32
    scf.if %11 {
      %c0_10 = arith.constant 0 : index
      %c0_11 = arith.constant 0 : index
      %12 = vector.load %arg6[%c0_10, %c0_11] : memref<8x128xf32, #tpu.memory_space<vmem>>, vector<8x128xf32>
      %c0_12 = arith.constant 0 : index
      %c0_13 = arith.constant 0 : index
      %13 = vector.load %arg4[%c0_12, %c0_13] : memref<8x128xf32, #tpu.memory_space<vmem>>, vector<8x128xf32>
      tpu.vector_store %arg4[%c0_12, %c0_13], %12 {strides = array<i32>} : memref<8x128xf32, #tpu.memory_space<vmem>>, vector<8x128xf32>,
      %cst_14 = arith.constant dense<0.000000e+00> : vector<128xf32>
      %14 = vector.multi_reduction <add>, %12, %cst_14 [0] : vector<8x128xf32> to vector<128xf32>
      %15 = vector.shape_cast %14 : vector<128xf32> to vector<1x128xf32>
      %16 = arith.mulf %12, %12 : vector<8x128xf32>
      %cst_15 = arith.constant dense<0.000000e+00> : vector<128xf32>
      %17 = vector.multi_reduction <add>, %16, %cst_15 [0] : vector<8x128xf32> to vector<128xf32>
      %18 = vector.shape_cast %17 : vector<128xf32> to vector<1x128xf32>
      %19 = tpu.iota {dimensions = array<i32: 0>} : vector<8x128xi32>
      %c0_i32_16 = arith.constant 0 : i32
      %20 = vector.broadcast %c0_i32_16 : i32 to vector<8x128xi32>
      %21 = arith.cmpi eq, %19, %20 : vector<8x128xi32>
      %c1_i32 = arith.constant 1 : i32
      %22 = vector.broadcast %c1_i32 : i32 to vector<8x128xi32>
      %23 = arith.cmpi eq, %19, %22 : vector<8x128xi32>
      %cst_17 = arith.constant 0.000000e+00 : f32
      %24 = vector.shape_cast %18 : vector<1x128xf32> to vector<1x128xf32>
      %25 = vector.broadcast %24 : vector<1x128xf32> to vector<8x128xf32>
      %26 = vector.broadcast %cst_17 : f32 to vector<8x128xf32>
      %27 = arith.select %23, %25, %26 : vector<8x128xi1>, vector<8x128xf32>
      %28 = vector.shape_cast %15 : vector<1x128xf32> to vector<1x128xf32>
      %29 = vector.broadcast %28 : vector<1x128xf32> to vector<8x128xf32>
      %30 = arith.select %21, %29, %27 : vector<8x128xi1>, vector<8x128xf32>
      %31 = vector.shape_cast %30 : vector<8x128xf32> to vector<1x8x128xf32>
      %c0_18 = arith.constant 0 : index
      %c0_19 = arith.constant 0 : index
      %c0_20 = arith.constant 0 : index
      %32 = vector.load %arg5[%c0_18, %c0_19, %c0_20] : memref<1x8x128xf32, #tpu.memory_space<vmem>>, vector<1x8x128xf32>
      tpu.vector_store %arg5[%c0_18, %c0_19, %c0_20], %31 {strides = array<i32>} : memref<1x8x128xf32, #tpu.memory_space<vmem>>, vector<1x8x128xf32>,
    } else {
    }
    return
  }
  func.func @transform_0(%arg0: i32, %arg1: i32) -> (i32, i32) {
    %c0_i32 = arith.constant 0 : i32
    return %arg0, %arg1 : i32, i32
  }
  func.func @transform_1(%arg0: i32, %arg1: i32) -> (i32, i32) {
    %c0_i32 = arith.constant 0 : i32
    %c0_i32_0 = arith.constant 0 : i32
    return %arg1, %c0_i32 : i32, i32
  }
  func.func @transform_2(%arg0: i32, %arg1: i32) -> (i32, i32) {
    %c0_i32 = arith.constant 0 : i32
    %c0_i32_0 = arith.constant 0 : i32
    return %arg0, %c0_i32 : i32, i32
  }
  func.func @transform_3(%arg0: i32, %arg1: i32) -> (i32, i32, i32) {
    %c0_i32 = arith.constant 0 : i32
    %c0_i32_0 = arith.constant 0 : i32
    %c0_i32_1 = arith.constant 0 : i32
    return %arg0, %c0_i32, %c0_i32_0 : i32, i32, i32
  }
}

module attributes {stable_mosaic.version = 11 : i64} {
  func.func @_affine_relu_kernel(%arg0: i32, %arg1: memref<8x128xf32, #tpu.memory_space<vmem>>, %arg2: memref<1x128xf32, #tpu.memory_space<vmem>>, %arg3: memref<1x128xf32, #tpu.memory_space<vmem>>, %arg4: memref<8x128xf32, #tpu.memory_space<vmem>>) attributes {dimension_semantics = [#tpu.dimension_semantics<parallel>], iteration_bounds = array<i64: 1>, scalar_prefetch = 0 : i64, scratch_operands = 0 : i64, tpu.core_type = #tpu.core_type<tc>, window_params = [{transform_indices = @transform_0, window_bounds = array<i64: 8, 128>}, {pipeline_mode = #tpu.pipeline_mode<synchronous>, transform_indices = @transform_1, window_bounds = array<i64: 1, 128>}, {pipeline_mode = #tpu.pipeline_mode<synchronous>, transform_indices = @transform_2, window_bounds = array<i64: 1, 128>}, {transform_indices = @transform_3, window_bounds = array<i64: 8, 128>}]} {
    %c0 = arith.constant 0 : index
    %c0_0 = arith.constant 0 : index
    %0 = vector.load %arg1[%c0, %c0_0] : memref<8x128xf32, #tpu.memory_space<vmem>>, vector<8x128xf32>
    %c0_1 = arith.constant 0 : index
    %c0_2 = arith.constant 0 : index
    %1 = vector.load %arg2[%c0_1, %c0_2] : memref<1x128xf32, #tpu.memory_space<vmem>>, vector<1x128xf32>
    %2 = vector.broadcast %1 : vector<1x128xf32> to vector<8x128xf32>
    %3 = arith.mulf %0, %2 : vector<8x128xf32>
    %c0_3 = arith.constant 0 : index
    %c0_4 = arith.constant 0 : index
    %4 = vector.load %arg3[%c0_3, %c0_4] : memref<1x128xf32, #tpu.memory_space<vmem>>, vector<1x128xf32>
    %5 = vector.broadcast %4 : vector<1x128xf32> to vector<8x128xf32>
    %6 = arith.addf %3, %5 : vector<8x128xf32>
    %cst = arith.constant 0.000000e+00 : f32
    %7 = vector.broadcast %cst : f32 to vector<8x128xf32>
    %8 = arith.maximumf %6, %7 : vector<8x128xf32>
    %c0_5 = arith.constant 0 : index
    %c0_6 = arith.constant 0 : index
    %9 = vector.load %arg4[%c0_5, %c0_6] : memref<8x128xf32, #tpu.memory_space<vmem>>, vector<8x128xf32>
    tpu.vector_store %arg4[%c0_5, %c0_6], %8 {strides = array<i32>} : memref<8x128xf32, #tpu.memory_space<vmem>>, vector<8x128xf32>,
    return
  }
  func.func @transform_0(%arg0: i32) -> (i32, i32) {
    %c0_i32 = arith.constant 0 : i32
    %c0_i32_0 = arith.constant 0 : i32
    return %arg0, %c0_i32 : i32, i32
  }
  func.func @transform_1(%arg0: i32) -> (i32, i32) {
    %c0_i32 = arith.constant 0 : i32
    %c0_i32_0 = arith.constant 0 : i32
    %c0_i32_1 = arith.constant 0 : i32
    return %c0_i32, %c0_i32_0 : i32, i32
  }
  func.func @transform_2(%arg0: i32) -> (i32, i32) {
    %c0_i32 = arith.constant 0 : i32
    %c0_i32_0 = arith.constant 0 : i32
    %c0_i32_1 = arith.constant 0 : i32
    return %c0_i32, %c0_i32_0 : i32, i32
  }
  func.func @transform_3(%arg0: i32) -> (i32, i32) {
    %c0_i32 = arith.constant 0 : i32
    %c0_i32_0 = arith.constant 0 : i32
    return %arg0, %c0_i32 : i32, i32
  }
}

module attributes {stable_mosaic.version = 11 : i64} {
  func.func @_gemm_stats_kernel(%arg0: i32, %arg1: i32, %arg2: memref<8x384xbf16, #tpu.memory_space<vmem>>, %arg3: memref<384x128xbf16, #tpu.memory_space<vmem>>, %arg4: memref<8x128xf32, #tpu.memory_space<vmem>>, %arg5: memref<1x8x128xf32, #tpu.memory_space<vmem>>, %arg6: memref<8x128xf32, #tpu.memory_space<vmem>>) attributes {dimension_semantics = [#tpu.dimension_semantics<parallel>, #tpu.dimension_semantics<arbitrary>], iteration_bounds = array<i64: 1, 1>, scalar_prefetch = 0 : i64, scratch_operands = 1 : i64, tpu.core_type = #tpu.core_type<tc>, window_params = [{transform_indices = @transform_0, window_bounds = array<i64: 8, 384>}, {transform_indices = @transform_1, window_bounds = array<i64: 384, 128>}, {transform_indices = @transform_2, window_bounds = array<i64: 8, 128>}, {transform_indices = @transform_3, window_bounds = array<i64: 1, 8, 128>}]} {
    %c0_i32 = arith.constant 0 : i32
    %0 = arith.cmpi eq, %arg1, %c0_i32 : i32
    %1 = arith.extui %0 : i1 to i32
    %c0_i32_0 = arith.constant 0 : i32
    %2 = arith.cmpi ne, %1, %c0_i32_0 : i32
    scf.if %2 {
      %cst_10 = arith.constant 0.000000e+00 : f32
      %12 = vector.broadcast %cst_10 : f32 to vector<8x128xf32>
      %c0_11 = arith.constant 0 : index
      %c0_12 = arith.constant 0 : index
      %13 = vector.load %arg6[%c0_11, %c0_12] : memref<8x128xf32, #tpu.memory_space<vmem>>, vector<8x128xf32>
      tpu.vector_store %arg6[%c0_11, %c0_12], %12 {strides = array<i32>} : memref<8x128xf32, #tpu.memory_space<vmem>>, vector<8x128xf32>,
    } else {
    }
    %c0 = arith.constant 0 : index
    %c0_1 = arith.constant 0 : index
    %3 = vector.load %arg6[%c0, %c0_1] : memref<8x128xf32, #tpu.memory_space<vmem>>, vector<8x128xf32>
    %c0_2 = arith.constant 0 : index
    %c0_3 = arith.constant 0 : index
    %4 = vector.load %arg2[%c0_2, %c0_3] : memref<8x384xbf16, #tpu.memory_space<vmem>>, vector<8x384xbf16>
    %c0_4 = arith.constant 0 : index
    %c0_5 = arith.constant 0 : index
    %5 = vector.load %arg3[%c0_4, %c0_5] : memref<384x128xbf16, #tpu.memory_space<vmem>>, vector<384x128xbf16>
    %cst = arith.constant dense<0.000000e+00> : vector<8x128xf32>
    %6 = tpu.matmul %4, %5, %cst {dimension_numbers = #tpu.dot_dimension_numbers<[1], [0], [0], [1], [0, 0, 1, 1], [], []>} : vector<8x384xbf16>, vector<384x128xbf16>, vector<8x128xf32> -> vector<8x128xf32>
    %7 = arith.addf %3, %6 : vector<8x128xf32>
    %c0_6 = arith.constant 0 : index
    %c0_7 = arith.constant 0 : index
    %8 = vector.load %arg6[%c0_6, %c0_7] : memref<8x128xf32, #tpu.memory_space<vmem>>, vector<8x128xf32>
    tpu.vector_store %arg6[%c0_6, %c0_7], %7 {strides = array<i32>} : memref<8x128xf32, #tpu.memory_space<vmem>>, vector<8x128xf32>,
    %c0_i32_8 = arith.constant 0 : i32
    %9 = arith.cmpi eq, %arg1, %c0_i32_8 : i32
    %10 = arith.extui %9 : i1 to i32
    %c0_i32_9 = arith.constant 0 : i32
    %11 = arith.cmpi ne, %10, %c0_i32_9 : i32
    scf.if %11 {
      %c0_10 = arith.constant 0 : index
      %c0_11 = arith.constant 0 : index
      %12 = vector.load %arg6[%c0_10, %c0_11] : memref<8x128xf32, #tpu.memory_space<vmem>>, vector<8x128xf32>
      %c0_12 = arith.constant 0 : index
      %c0_13 = arith.constant 0 : index
      %13 = vector.load %arg4[%c0_12, %c0_13] : memref<8x128xf32, #tpu.memory_space<vmem>>, vector<8x128xf32>
      tpu.vector_store %arg4[%c0_12, %c0_13], %12 {strides = array<i32>} : memref<8x128xf32, #tpu.memory_space<vmem>>, vector<8x128xf32>,
      %cst_14 = arith.constant dense<0.000000e+00> : vector<128xf32>
      %14 = vector.multi_reduction <add>, %12, %cst_14 [0] : vector<8x128xf32> to vector<128xf32>
      %15 = vector.shape_cast %14 : vector<128xf32> to vector<1x128xf32>
      %16 = arith.mulf %12, %12 : vector<8x128xf32>
      %cst_15 = arith.constant dense<0.000000e+00> : vector<128xf32>
      %17 = vector.multi_reduction <add>, %16, %cst_15 [0] : vector<8x128xf32> to vector<128xf32>
      %18 = vector.shape_cast %17 : vector<128xf32> to vector<1x128xf32>
      %19 = tpu.iota {dimensions = array<i32: 0>} : vector<8x128xi32>
      %c0_i32_16 = arith.constant 0 : i32
      %20 = vector.broadcast %c0_i32_16 : i32 to vector<8x128xi32>
      %21 = arith.cmpi eq, %19, %20 : vector<8x128xi32>
      %c1_i32 = arith.constant 1 : i32
      %22 = vector.broadcast %c1_i32 : i32 to vector<8x128xi32>
      %23 = arith.cmpi eq, %19, %22 : vector<8x128xi32>
      %cst_17 = arith.constant 0.000000e+00 : f32
      %24 = vector.shape_cast %18 : vector<1x128xf32> to vector<1x128xf32>
      %25 = vector.broadcast %24 : vector<1x128xf32> to vector<8x128xf32>
      %26 = vector.broadcast %cst_17 : f32 to vector<8x128xf32>
      %27 = arith.select %23, %25, %26 : vector<8x128xi1>, vector<8x128xf32>
      %28 = vector.shape_cast %15 : vector<1x128xf32> to vector<1x128xf32>
      %29 = vector.broadcast %28 : vector<1x128xf32> to vector<8x128xf32>
      %30 = arith.select %21, %29, %27 : vector<8x128xi1>, vector<8x128xf32>
      %31 = vector.shape_cast %30 : vector<8x128xf32> to vector<1x8x128xf32>
      %c0_18 = arith.constant 0 : index
      %c0_19 = arith.constant 0 : index
      %c0_20 = arith.constant 0 : index
      %32 = vector.load %arg5[%c0_18, %c0_19, %c0_20] : memref<1x8x128xf32, #tpu.memory_space<vmem>>, vector<1x8x128xf32>
      tpu.vector_store %arg5[%c0_18, %c0_19, %c0_20], %31 {strides = array<i32>} : memref<1x8x128xf32, #tpu.memory_space<vmem>>, vector<1x8x128xf32>,
    } else {
    }
    return
  }
  func.func @transform_0(%arg0: i32, %arg1: i32) -> (i32, i32) {
    %c0_i32 = arith.constant 0 : i32
    return %arg0, %arg1 : i32, i32
  }
  func.func @transform_1(%arg0: i32, %arg1: i32) -> (i32, i32) {
    %c0_i32 = arith.constant 0 : i32
    %c0_i32_0 = arith.constant 0 : i32
    return %arg1, %c0_i32 : i32, i32
  }
  func.func @transform_2(%arg0: i32, %arg1: i32) -> (i32, i32) {
    %c0_i32 = arith.constant 0 : i32
    %c0_i32_0 = arith.constant 0 : i32
    return %arg0, %c0_i32 : i32, i32
  }
  func.func @transform_3(%arg0: i32, %arg1: i32) -> (i32, i32, i32) {
    %c0_i32 = arith.constant 0 : i32
    %c0_i32_0 = arith.constant 0 : i32
    %c0_i32_1 = arith.constant 0 : i32
    return %arg0, %c0_i32, %c0_i32_0 : i32, i32, i32
  }
}

module attributes {stable_mosaic.version = 11 : i64} {
  func.func @_affine_relu_kernel(%arg0: i32, %arg1: memref<8x128xf32, #tpu.memory_space<vmem>>, %arg2: memref<1x128xf32, #tpu.memory_space<vmem>>, %arg3: memref<1x128xf32, #tpu.memory_space<vmem>>, %arg4: memref<8x128xf32, #tpu.memory_space<vmem>>) attributes {dimension_semantics = [#tpu.dimension_semantics<parallel>], iteration_bounds = array<i64: 1>, scalar_prefetch = 0 : i64, scratch_operands = 0 : i64, tpu.core_type = #tpu.core_type<tc>, window_params = [{transform_indices = @transform_0, window_bounds = array<i64: 8, 128>}, {pipeline_mode = #tpu.pipeline_mode<synchronous>, transform_indices = @transform_1, window_bounds = array<i64: 1, 128>}, {pipeline_mode = #tpu.pipeline_mode<synchronous>, transform_indices = @transform_2, window_bounds = array<i64: 1, 128>}, {transform_indices = @transform_3, window_bounds = array<i64: 8, 128>}]} {
    %c0 = arith.constant 0 : index
    %c0_0 = arith.constant 0 : index
    %0 = vector.load %arg1[%c0, %c0_0] : memref<8x128xf32, #tpu.memory_space<vmem>>, vector<8x128xf32>
    %c0_1 = arith.constant 0 : index
    %c0_2 = arith.constant 0 : index
    %1 = vector.load %arg2[%c0_1, %c0_2] : memref<1x128xf32, #tpu.memory_space<vmem>>, vector<1x128xf32>
    %2 = vector.broadcast %1 : vector<1x128xf32> to vector<8x128xf32>
    %3 = arith.mulf %0, %2 : vector<8x128xf32>
    %c0_3 = arith.constant 0 : index
    %c0_4 = arith.constant 0 : index
    %4 = vector.load %arg3[%c0_3, %c0_4] : memref<1x128xf32, #tpu.memory_space<vmem>>, vector<1x128xf32>
    %5 = vector.broadcast %4 : vector<1x128xf32> to vector<8x128xf32>
    %6 = arith.addf %3, %5 : vector<8x128xf32>
    %cst = arith.constant 0.000000e+00 : f32
    %7 = vector.broadcast %cst : f32 to vector<8x128xf32>
    %8 = arith.maximumf %6, %7 : vector<8x128xf32>
    %c0_5 = arith.constant 0 : index
    %c0_6 = arith.constant 0 : index
    %9 = vector.load %arg4[%c0_5, %c0_6] : memref<8x128xf32, #tpu.memory_space<vmem>>, vector<8x128xf32>
    tpu.vector_store %arg4[%c0_5, %c0_6], %8 {strides = array<i32>} : memref<8x128xf32, #tpu.memory_space<vmem>>, vector<8x128xf32>,
    return
  }
  func.func @transform_0(%arg0: i32) -> (i32, i32) {
    %c0_i32 = arith.constant 0 : i32
    %c0_i32_0 = arith.constant 0 : i32
    return %arg0, %c0_i32 : i32, i32
  }
  func.func @transform_1(%arg0: i32) -> (i32, i32) {
    %c0_i32 = arith.constant 0 : i32
    %c0_i32_0 = arith.constant 0 : i32
    %c0_i32_1 = arith.constant 0 : i32
    return %c0_i32, %c0_i32_0 : i32, i32
  }
  func.func @transform_2(%arg0: i32) -> (i32, i32) {
    %c0_i32 = arith.constant 0 : i32
    %c0_i32_0 = arith.constant 0 : i32
    %c0_i32_1 = arith.constant 0 : i32
    return %c0_i32, %c0_i32_0 : i32, i32
  }
  func.func @transform_3(%arg0: i32) -> (i32, i32) {
    %c0_i32 = arith.constant 0 : i32
    %c0_i32_0 = arith.constant 0 : i32
    return %arg0, %c0_i32 : i32, i32
  }
}

</mosaic_0001>

<bundles_post_ra>
// kernel: fpn_encoder_forward.13
= control target key start
LH: loop header
LB: loop body
LE: loop exit
PB: predicated region body
PF: predicated region fallthrough
CT: control target
= control target key end

     0   :  { %s254_s0 = inlined_call_operand.vmem [shape: f32[128,128], index: 0, kind: input, shape index: {}]   ;;  %s255_s1 = inlined_call_operand.vmem [shape: f32[1,128], index: 1, kind: input, shape index: {}]   ;;  %s256_s2 = inlined_call_operand.vmem [shape: f32[1,128], index: 2, kind: input, shape index: {}]   ;;  %s257_s3 = inlined_call_operand.vmem [shape: f32[128,128], index: 3, kind: output, shape index: {}]  }
   0x1   :  { %v14_v0 = vld [vmem:[%s254_s0] sm:$0xff]  ;;  %v15_v4 = vld [vmem:[%s254_s0 + $0x8] sm:$0xff]  ;;  %v16_v5 = vld [vmem:[%s254_s0 + $0x10] sm:$0xff] }
   0x2   :  { %v112_v1 = vld [vmem:[%s255_s1] ss:$0 sm:$0xff]  ;;  %v17_v6 = vld [vmem:[%s254_s0 + $0x18] sm:$0xff]  ;;  %v19_v11 = vld [vmem:[%s254_s0 + $0x28] sm:$0xff] }
   0x3   :  { %v143_v2 = vld [vmem:[%s256_s2] ss:$0 sm:$0xff]  ;;  %v37_v3 = vmul.f32 %v112_v1, %v14_v0  ;;  %v38_v7 = vmul.f32 %v112_v1, %v15_v4  ;;  %v39_v8 = vmul.f32 %v112_v1, %v16_v5  ;;  %v40_v9 = vmul.f32 %v112_v1, %v17_v6  ;;  %v20_v12 = vld [vmem:[%s254_s0 + $0x30] sm:$0xff]  ;;  %v21_v17 = vld [vmem:[%s254_s0 + $0x38] sm:$0xff] }
   0x4   :  { %v18_v10 = vld [vmem:[%s254_s0 + $0x20] sm:$0xff]  ;;  %v42_v15 = vmul.f32 %v112_v1, %v19_v11  ;;  %v43_v16 = vmul.f32 %v112_v1, %v20_v12  ;;  %v44_v21 = vmul.f32 %v112_v1, %v21_v17  ;;  %v23_v27 = vld [vmem:[%s254_s0 + $0x48] sm:$0xff]  ;;  %v24_v28 = vld [vmem:[%s254_s0 + $0x50] sm:$0xff] }
   0x5   :  { %v60_v13 = vadd.f32 %v143_v2, %v37_v3  ;;  %v41_v14 = vmul.f32 %v112_v1, %v18_v10  ;;  %v61_v18 = vadd.f32 %v143_v2, %v38_v7  ;;  %v62_v19 = vadd.f32 %v143_v2, %v39_v8  ;;  %v22_v22 = vld [vmem:[%s254_s0 + $0x40] sm:$0xff]  ;;  %v25_v29 = vld [vmem:[%s254_s0 + $0x58] sm:$0xff]  ;;  %v27_v35 = vld [vmem:[%s254_s0 + $0x68] sm:$0xff] }
   0x6   :  { %v63_v20 = vadd.f32 %v143_v2, %v40_v9  ;;  %v65_v25 = vadd.f32 %v143_v2, %v42_v15  ;;  %v66_v26 = vadd.f32 %v143_v2, %v43_v16  ;;  %v67_v33 = vadd.f32 %v143_v2, %v44_v21  ;;  %v26_v34 = vld [vmem:[%s254_s0 + $0x60] sm:$0xff]  ;;  %v28_v36 = vld [vmem:[%s254_s0 + $0x70] sm:$0xff]  ;;  %v29_v41 = vld [vmem:[%s254_s0 + $0x78] sm:$0xff] }
   0x7   :  { %v76_v23 = vmax.f32 %v60_v13, 0.0  ;;  %v64_v24 = vadd.f32 %v143_v2, %v41_v14  ;;  %v77_v30 = vmax.f32 %v61_v18, 0.0  ;;  %v78_v31 = vmax.f32 %v62_v19, 0.0 }
   0x8   :  { %v79_v32 = vmax.f32 %v63_v20, 0.0  ;;  %v81_v38 = vmax.f32 %v65_v25, 0.0  ;;  %v82_v39 = vmax.f32 %v66_v26, 0.0  ;;  %v45_v40 = vmul.f32 %v112_v1, %v22_v22 }
   0x9   :  { %92 = vst [vmem:[%s257_s3] sm:$0xff] %v76_v23  ;;  %v80_v37 = vmax.f32 %v64_v24, 0.0  ;;  %93 = vst [vmem:[%s257_s3 + $0x8] sm:$0xff] %v77_v30  ;;  %v83_v42 = vmax.f32 %v67_v33, 0.0  ;;  %v46_v43 = vmul.f32 %v112_v1, %v23_v27  ;;  %v47_v44 = vmul.f32 %v112_v1, %v24_v28 }
   0xa   :  { %94 = vst [vmem:[%s257_s3 + $0x10] sm:$0xff] %v78_v31  ;;  %95 = vst [vmem:[%s257_s3 + $0x18] sm:$0xff] %v79_v32  ;;  %v48_v45 = vmul.f32 %v112_v1, %v25_v29  ;;  %v68_v46 = vadd.f32 %v143_v2, %v45_v40  ;;  %v49_v47 = vmul.f32 %v112_v1, %v26_v34 }
   0xb   :  { %96 = vst [vmem:[%s257_s3 + $0x20] sm:$0xff] %v80_v37  ;;  %97 = vst [vmem:[%s257_s3 + $0x28] sm:$0xff] %v81_v38  ;;  %v50_v48 = vmul.f32 %v112_v1, %v27_v35  ;;  %v51_v49 = vmul.f32 %v112_v1, %v28_v36  ;;  %v69_v50 = vadd.f32 %v143_v2, %v46_v43 }
   0xc   :  { %98 = vst [vmem:[%s257_s3 + $0x30] sm:$0xff] %v82_v39  ;;  %99 = vst [vmem:[%s257_s3 + $0x38] sm:$0xff] %v83_v42  ;;  %v70_v51 = vadd.f32 %v143_v2, %v47_v44  ;;  %v71_v52 = vadd.f32 %v143_v2, %v48_v45  ;;  %v52_v53 = vmul.f32 %v112_v1, %v29_v41  ;;  %v84_v54 = vmax.f32 %v68_v46, 0.0 }
   0xd   :  { %v72_v55 = vadd.f32 %v143_v2, %v49_v47  ;;  %v73_v56 = vadd.f32 %v143_v2, %v50_v48  ;;  %v74_v57 = vadd.f32 %v143_v2, %v51_v49  ;;  %v85_v58 = vmax.f32 %v69_v50, 0.0 }
   0xe   :  { %v86_v59 = vmax.f32 %v70_v51, 0.0  ;;  %v87_v60 = vmax.f32 %v71_v52, 0.0  ;;  %v75_v61 = vadd.f32 %v143_v2, %v52_v53  ;;  %100 = vst [vmem:[%s257_s3 + $0x40] sm:$0xff] %v84_v54 }
   0xf   :  { %v88_v62 = vmax.f32 %v72_v55, 0.0  ;;  %v89_v63 = vmax.f32 %v73_v56, 0.0  ;;  %v90_v0 = vmax.f32 %v74_v57, 0.0  ;;  %101 = vst [vmem:[%s257_s3 + $0x48] sm:$0xff] %v85_v58 }
  0x10   :  { %102 = vst [vmem:[%s257_s3 + $0x50] sm:$0xff] %v86_v59  ;;  %103 = vst [vmem:[%s257_s3 + $0x58] sm:$0xff] %v87_v60  ;;  %v91_v1 = vmax.f32 %v75_v61, 0.0 }
  0x11   :  { %104 = vst [vmem:[%s257_s3 + $0x60] sm:$0xff] %v88_v62  ;;  %105 = vst [vmem:[%s257_s3 + $0x68] sm:$0xff] %v89_v63 }
  0x12   :  { %106 = vst [vmem:[%s257_s3 + $0x70] sm:$0xff] %v90_v0  ;;  %107 = vst [vmem:[%s257_s3 + $0x78] sm:$0xff] %v91_v1 }

// kernel: fpn_encoder_forward.12
= control target key start
LH: loop header
LB: loop body
LE: loop exit
PB: predicated region body
PF: predicated region fallthrough
CT: control target
= control target key end

     0   :  { %s630_s1 = inlined_call_operand.vmem [shape: bf16[128,128], index: 1, kind: input, shape index: {}]   ;;  %s631_s0 = inlined_call_operand.vmem [shape: bf16[128,128], index: 0, kind: input, shape index: {}]   ;;  %s632_s2 = inlined_call_operand.vmem [shape: f32[128,128], index: 2, kind: output, shape index: {0}]   ;;  %s633_s3 = inlined_call_operand.vmem [shape: f32[1,8,128], index: 3, kind: output, shape index: {1}]  }
   0x1   :  { %v495_v0 = vld [vmem:[%s630_s1] sm:$0xff]   ;;  %v496_v1 = vld [vmem:[%s630_s1 + $0x8] sm:$0xff]   ;;  %v497_v2 = vld [vmem:[%s630_s1 + $0x10] sm:$0xff]  }
   0x2   :  { %447 = vmatprep.subr.bf16.mxu0 %v495_v0  ;;  %479 = vmatprep.subr.bf16.mxu1 %v495_v0  ;;  %v498_v3 = vld [vmem:[%s630_s1 + $0x18] sm:$0xff]   ;;  %v503_v4 = vld [vmem:[%s631_s0] sm:$0xff]   ;;  %v500_v7 = vld [vmem:[%s630_s1 + $0x28] sm:$0xff]  }
   0x3   :  { %448 = vmatpush3.bf16.msra.mxu0 %v495_v0  ;;  %487 = vmatpush3.bf16.msra.mxu1 %v495_v0  ;;  %v499_v5 = vld [vmem:[%s630_s1 + $0x20] sm:$0xff]   ;;  %v501_v8 = vld [vmem:[%s630_s1 + $0x30] sm:$0xff]   ;;  %v502_v9 = vld [vmem:[%s630_s1 + $0x38] sm:$0xff]  }
   0x4   :  { %449 = vmatprep.subr.bf16.mxu0 %v496_v1  ;;  %480 = vmatprep.subr.bf16.mxu1 %v496_v1  ;;  %v507_v6 = vld [vmem:[%s631_s0 + $0x20] sm:$0xff]   ;;  %v504_v10 = vld [vmem:[%s631_s0 + $0x8] sm:$0xff]   ;;  %v505_v12 = vld [vmem:[%s631_s0 + $0x10] sm:$0xff]  }
   0x5   :  { %463 = vmatprep.mubr.bf16.mxu0 %v503_v4  ;;  %471 = vmatprep.mubr.bf16.mxu1 %v507_v6  ;;  %v508_v11 = vld [vmem:[%s631_s0 + $0x28] sm:$0xff]   ;;  %v509_v13 = vld [vmem:[%s631_s0 + $0x30] sm:$0xff]   ;;  %v506_v14 = vld [vmem:[%s631_s0 + $0x18] sm:$0xff]  }
   0x6   :  { %v510_v15 = vld [vmem:[%s631_s0 + $0x38] sm:$0xff]  }
   0x7   :  { %450 = vmatpush3.bf16.msra.mxu0 %v496_v1  ;;  %488 = vmatpush3.bf16.msra.mxu1 %v496_v1 }
   0x8   :  { %451 = vmatprep.subr.bf16.mxu0 %v497_v2  ;;  %481 = vmatprep.subr.bf16.mxu1 %v497_v2 }
   0xb   :  { %452 = vmatpush3.bf16.msra.mxu0 %v497_v2  ;;  %489 = vmatpush3.bf16.msra.mxu1 %v497_v2 }
   0xc   :  { %453 = vmatprep.subr.bf16.mxu0 %v498_v3  ;;  %482 = vmatprep.subr.bf16.mxu1 %v498_v3 }
   0xf   :  { %454 = vmatpush3.bf16.msra.mxu0 %v498_v3  ;;  %490 = vmatpush3.bf16.msra.mxu1 %v498_v3 }
  0x10   :  { %455 = vmatprep.subr.bf16.mxu0 %v499_v5  ;;  %483 = vmatprep.subr.bf16.mxu1 %v499_v5 }
  0x13   :  { %456 = vmatpush3.bf16.msra.mxu0 %v499_v5  ;;  %491 = vmatpush3.bf16.msra.mxu1 %v499_v5 }
  0x14   :  { %457 = vmatprep.subr.bf16.mxu0 %v500_v7  ;;  %484 = vmatprep.subr.bf16.mxu1 %v500_v7 }
  0x17   :  { %458 = vmatpush3.bf16.msra.mxu0 %v500_v7  ;;  %492 = vmatpush3.bf16.msra.mxu1 %v500_v7 }
  0x18   :  { %459 = vmatprep.subr.bf16.mxu0 %v501_v8  ;;  %485 = vmatprep.subr.bf16.mxu1 %v501_v8 }
  0x1b   :  { %460 = vmatpush3.bf16.msra.mxu0 %v501_v8  ;;  %493 = vmatpush3.bf16.msra.mxu1 %v501_v8 }
  0x1c   :  { %461 = vmatprep.subr.bf16.mxu0 %v502_v9  ;;  %486 = vmatprep.subr.bf16.mxu1 %v502_v9 }
  0x1f   :  { %462 = vmatpush3.bf16.msra.mxu0 %v502_v9  ;;  %494 = vmatpush3.bf16.msra.mxu1 %v502_v9 }
  0x22   :  { %464 = vmatmul.mubr.bf16.vlgmr.msra.gmra.mrb[0].mxu0 %v504_v10  ;;  %472 = vmatmul.mubr.bf16.vlgmr.msra.gmra.mrb[0].mxu1 %v508_v11 }
  0x23   :  { %467 = vmatprep.mubr.bf16.mxu0 %v505_v12  ;;  %475 = vmatprep.mubr.bf16.mxu1 %v509_v13 }
  0x2a   :  { %468 = vmatmul.mubr.bf16.gmra.mrb[4].mxu0 %v506_v14  ;;  %476 = vmatmul.mubr.bf16.gmra.mrb[4].mxu1 %v510_v15 }
  0xf5   :  { %v465_v16 = vpop.f32.mrb[0].mxu0  ;;  %v473_v17 = vpop.f32.mrb[0].mxu1 }
  0xf6   :  { %328 = vst [vmem:[%s632_s2 + $0x10] sm:$0xff] %v465_v16  ;;  %v212_v18 = vpop.f32.mrb[1].mxu0  ;;  %336 = vst [vmem:[%s632_s2 + $0x50] sm:$0xff] %v473_v17  ;;  %v244_v19 = vpop.f32.mrb[1].mxu1  ;;  %v365_v27 = vmul.f32 %v465_v16, %v465_v16  ;;  %v373_v59 = vmul.f32 %v473_v17, %v473_v17 }
  0xf7   :  { %326 = vst [vmem:[%s632_s2] sm:$0xff] %v212_v18  ;;  %v466_v20 = vpop.f32.mrb[2].mxu0  ;;  %334 = vst [vmem:[%s632_s2 + $0x40] sm:$0xff] %v244_v19  ;;  %v474_v21 = vpop.f32.mrb[2].mxu1  ;;  %v363_v24 = vmul.f32 %v212_v18, %v212_v18  ;;  %v371_v53 = vmul.f32 %v244_v19, %v244_v19 }
  0xf8   :  { %329 = vst [vmem:[%s632_s2 + $0x18] sm:$0xff] %v466_v20  ;;  %v215_v22 = vpop.f32.mrb[3].mxu0  ;;  %337 = vst [vmem:[%s632_s2 + $0x58] sm:$0xff] %v474_v21  ;;  %v247_v23 = vpop.f32.mrb[3].mxu1  ;;  %v366_v30 = vmul.f32 %v466_v20, %v466_v20  ;;  %v374_v62 = vmul.f32 %v474_v21, %v474_v21 }
  0xf9   :  { %327 = vst [vmem:[%s632_s2 + $0x8] sm:$0xff] %v215_v22  ;;  %v342_v25 = vadd.f32 %v215_v22, %v212_v18  ;;  %v364_v26 = vmul.f32 %v215_v22, %v215_v22  ;;  %335 = vst [vmem:[%s632_s2 + $0x48] sm:$0xff] %v247_v23  ;;  %v372_v58 = vmul.f32 %v247_v23, %v247_v23 }
  0xfb   :  { %v343_v28 = vadd.f32 %v465_v16, %v342_v25  ;;  %v379_v29 = vadd.f32 %v364_v26, %v363_v24 }
  0xfd   :  { %v380_v31 = vadd.f32 %v379_v29, %v365_v27  ;;  %v469_v32 = vpop.f32.mrb[4].mxu0  ;;  %v344_v33 = vadd.f32 %v466_v20, %v343_v28  ;;  %v477_v34 = vpop.f32.mrb[4].mxu1 }
  0xfe   :  { %332 = vst [vmem:[%s632_s2 + $0x30] sm:$0xff] %v469_v32  ;;  %v228_v35 = vpop.f32.mrb[5].mxu0  ;;  %340 = vst [vmem:[%s632_s2 + $0x70] sm:$0xff] %v477_v34  ;;  %v260_v36 = vpop.f32.mrb[5].mxu1  ;;  %v369_v47 = vmul.f32 %v469_v32, %v469_v32  ;;  %v377_v7 = vmul.f32 %v477_v34, %v477_v34 }
  0xff   :  { %330 = vst [vmem:[%s632_s2 + $0x20] sm:$0xff] %v228_v35  ;;  %v345_v37 = vadd.f32 %v344_v33, %v228_v35  ;;  %v367_v38 = vmul.f32 %v228_v35, %v228_v35  ;;  %v381_v39 = vadd.f32 %v380_v31, %v366_v30  ;;  %v470_v40 = vpop.f32.mrb[6].mxu0  ;;  %338 = vst [vmem:[%s632_s2 + $0x60] sm:$0xff] %v260_v36  ;;  %v478_v41 = vpop.f32.mrb[6].mxu1 }
 0x100   :  { %333 = vst [vmem:[%s632_s2 + $0x38] sm:$0xff] %v470_v40  ;;  %v231_v42 = vpop.f32.mrb[7].mxu0  ;;  %341 = vst [vmem:[%s632_s2 + $0x78] sm:$0xff] %v478_v41  ;;  %v263_v43 = vpop.f32.mrb[7].mxu1  ;;  %v370_v50 = vmul.f32 %v470_v40, %v470_v40  ;;  %v375_v1 = vmul.f32 %v260_v36, %v260_v36  ;;  %v378_v10 = vmul.f32 %v478_v41, %v478_v41 }
 0x101   :  { %v382_v44 = vadd.f32 %v381_v39, %v367_v38  ;;  %331 = vst [vmem:[%s632_s2 + $0x28] sm:$0xff] %v231_v42  ;;  %v346_v45 = vadd.f32 %v345_v37, %v231_v42  ;;  %v368_v46 = vmul.f32 %v231_v42, %v231_v42  ;;  %339 = vst [vmem:[%s632_s2 + $0x68] sm:$0xff] %v263_v43 }
 0x102   :  { %v376_v6 = vmul.f32 %v263_v43, %v263_v43 }
 0x103   :  { %v347_v48 = vadd.f32 %v469_v32, %v346_v45  ;;  %v383_v49 = vadd.f32 %v382_v44, %v368_v46 }
 0x105   :  { %v384_v51 = vadd.f32 %v383_v49, %v369_v47  ;;  %v348_v52 = vadd.f32 %v470_v40, %v347_v48 }
 0x107   :  { %v349_v54 = vadd.f32 %v348_v52, %v244_v19  ;;  %v385_v55 = vadd.f32 %v384_v51, %v370_v50 }
 0x109   :  { %v386_v56 = vadd.f32 %v385_v55, %v371_v53  ;;  %v350_v57 = vadd.f32 %v349_v54, %v247_v23 }
 0x10b   :  { %v351_v60 = vadd.f32 %v473_v17, %v350_v57  ;;  %v387_v61 = vadd.f32 %v386_v56, %v372_v58  ;;  %v400_v17 = vlaneseq }
 0x10d   :  { %v388_v63 = vadd.f32 %v387_v61, %v373_v59  ;;  %v352_v0 = vadd.f32 %v474_v21, %v351_v60  ;;  %v401_v22 = vshrl.u32 %v400_v17, 7 }
 0x10f   :  { %v353_v2 = vadd.f32 %v352_v0, %v260_v36  ;;  %v389_v3 = vadd.f32 %v388_v63, %v374_v62  ;;  %vm403_vm0 = vcmp.eq.s32.totalorder %v401_v22, 1  ;;  %vm402_vm1 = vcmp.eq.s32.totalorder %v401_v22, 0 }
 0x111   :  { %v390_v4 = vadd.f32 %v389_v3, %v375_v1  ;;  %v354_v5 = vadd.f32 %v353_v2, %v263_v43 }
 0x113   :  { %v355_v8 = vadd.f32 %v477_v34, %v354_v5  ;;  %v391_v9 = vadd.f32 %v390_v4, %v376_v6 }
 0x115   :  { %v356_v11 = vadd.f32 %v478_v41, %v355_v8  ;;  %v392_v12 = vadd.f32 %v391_v9, %v377_v7 }
 0x117   :  { %v357_v13 = vrot.slane %v356_v11, 4  ;;  %v393_v14 = vadd.f32 %v392_v12, %v378_v10 }
 0x119   :  { %v358_v15 = vadd.f32 %v357_v13, %v356_v11  ;;  %v394_v16 = vrot.slane %v393_v14, 4 }
 0x11b   :  { %v359_v18 = vrot.slane %v358_v15, 2  ;;  %v395_v19 = vadd.f32 %v394_v16, %v393_v14 }
 0x11d   :  { %v360_v20 = vadd.f32 %v359_v18, %v358_v15  ;;  %v396_v21 = vrot.slane %v395_v19, 2 }
 0x11f   :  { %v397_v23 = vadd.f32 %v396_v21, %v395_v19  ;;  %v361_v24 = vrot.slane %v360_v20, 1 }
 0x121   :  { %v398_v25 = vrot.slane %v397_v23, 1  ;;  %v362_v27 = vadd.f32 %v361_v24, %v360_v20 }
 0x123   :  { %v399_v26 = vadd.f32 %v398_v25, %v397_v23 }
 0x125   :  { %v404_v28 = vsel %vm403_vm0, %v399_v26, 0.0 }
 0x126   :  { %v405_v29 = vsel %vm402_vm1, %v362_v27, %v404_v28 }
 0x127   :  { %406 = vst [vmem:[%s633_s3] sm:$0xff] %v405_v29 }

// kernel: fpn_encoder_forward.17
= control target key start
LH: loop header
LB: loop body
LE: loop exit
PB: predicated region body
PF: predicated region fallthrough
CT: control target
= control target key end

     0   :  { %s104_s0 = inlined_call_operand.vmem [shape: f32[32,128], index: 0, kind: input, shape index: {}]   ;;  %s105_s1 = inlined_call_operand.vmem [shape: f32[1,128], index: 1, kind: input, shape index: {}]   ;;  %s106_s2 = inlined_call_operand.vmem [shape: f32[1,128], index: 2, kind: input, shape index: {}]   ;;  %s107_s3 = inlined_call_operand.vmem [shape: f32[32,128], index: 3, kind: output, shape index: {}]  }
   0x1   :  { %v14_v0 = vld [vmem:[%s104_s0] sm:$0xff]  ;;  %v15_v4 = vld [vmem:[%s104_s0 + $0x8] sm:$0xff]  ;;  %v16_v5 = vld [vmem:[%s104_s0 + $0x10] sm:$0xff] }
   0x2   :  { %v52_v1 = vld [vmem:[%s105_s1] ss:$0 sm:$0xff]  ;;  %v17_v6 = vld [vmem:[%s104_s0 + $0x18] sm:$0xff] }
   0x3   :  { %v53_v2 = vld [vmem:[%s106_s2] ss:$0 sm:$0xff]  ;;  %v25_v3 = vmul.f32 %v52_v1, %v14_v0  ;;  %v26_v7 = vmul.f32 %v52_v1, %v15_v4  ;;  %v27_v8 = vmul.f32 %v52_v1, %v16_v5  ;;  %v28_v9 = vmul.f32 %v52_v1, %v17_v6 }
   0x5   :  { %v36_v10 = vadd.f32 %v53_v2, %v25_v3  ;;  %v37_v11 = vadd.f32 %v53_v2, %v26_v7  ;;  %v38_v12 = vadd.f32 %v53_v2, %v27_v8  ;;  %v39_v13 = vadd.f32 %v53_v2, %v28_v9 }
   0x7   :  { %v40_v14 = vmax.f32 %v36_v10, 0.0  ;;  %v41_v15 = vmax.f32 %v37_v11, 0.0  ;;  %v42_v16 = vmax.f32 %v38_v12, 0.0  ;;  %v43_v17 = vmax.f32 %v39_v13, 0.0 }
   0x9   :  { %44 = vst [vmem:[%s107_s3] sm:$0xff] %v40_v14  ;;  %45 = vst [vmem:[%s107_s3 + $0x8] sm:$0xff] %v41_v15 }
   0xa   :  { %46 = vst [vmem:[%s107_s3 + $0x10] sm:$0xff] %v42_v16  ;;  %47 = vst [vmem:[%s107_s3 + $0x18] sm:$0xff] %v43_v17 }

// kernel: fpn_encoder_forward.16
= control target key start
LH: loop header
LB: loop body
LE: loop exit
PB: predicated region body
PF: predicated region fallthrough
CT: control target
= control target key end

     0   :  { %v196_v27 = vlaneseq  ;;  %s326_s1 = inlined_call_operand.vmem [shape: bf16[128,128], index: 1, kind: input, shape index: {}]   ;;  %s327_s0 = inlined_call_operand.vmem [shape: bf16[32,128], index: 0, kind: input, shape index: {}]   ;;  %s328_s2 = inlined_call_operand.vmem [shape: f32[32,128], index: 2, kind: output, shape index: {0}]   ;;  %s329_s3 = inlined_call_operand.vmem [shape: f32[1,8,128], index: 3, kind: output, shape index: {1}]  }
   0x1   :  { %v251_v0 = vld [vmem:[%s326_s1] sm:$0xff]   ;;  %v252_v1 = vld [vmem:[%s326_s1 + $0x8] sm:$0xff]   ;;  %v253_v2 = vld [vmem:[%s326_s1 + $0x10] sm:$0xff]  }
   0x2   :  { %231 = vmatprep.subr.bf16.mxu0 %v251_v0  ;;  %v254_v3 = vld [vmem:[%s326_s1 + $0x18] sm:$0xff]   ;;  %v259_v4 = vld [vmem:[%s327_s0] sm:$0xff]   ;;  %v256_v6 = vld [vmem:[%s326_s1 + $0x28] sm:$0xff]   ;;  %v197_v32 = vshrl.u32 %v196_v27, 7 }
   0x3   :  { %232 = vmatpush3.bf16.msra.mxu0 %v251_v0  ;;  %247 = vmatprep.mubr.bf16.mxu0 %v259_v4  ;;  %v255_v5 = vld [vmem:[%s326_s1 + $0x20] sm:$0xff]   ;;  %v257_v7 = vld [vmem:[%s326_s1 + $0x30] sm:$0xff]   ;;  %v258_v8 = vld [vmem:[%s326_s1 + $0x38] sm:$0xff]  }
   0x4   :  { %233 = vmatprep.subr.bf16.mxu0 %v252_v1  ;;  %v260_v9 = vld [vmem:[%s327_s0 + $0x8] sm:$0xff]   ;;  %vm199_vm0 = vcmp.eq.s32.totalorder %v197_v32, 1  ;;  %vm198_vm1 = vcmp.eq.s32.totalorder %v197_v32, 0 }
   0x7   :  { %234 = vmatpush3.bf16.msra.mxu0 %v252_v1 }
   0x8   :  { %235 = vmatprep.subr.bf16.mxu0 %v253_v2 }
   0xb   :  { %236 = vmatpush3.bf16.msra.mxu0 %v253_v2 }
   0xc   :  { %237 = vmatprep.subr.bf16.mxu0 %v254_v3 }
   0xf   :  { %238 = vmatpush3.bf16.msra.mxu0 %v254_v3 }
  0x10   :  { %239 = vmatprep.subr.bf16.mxu0 %v255_v5 }
  0x13   :  { %240 = vmatpush3.bf16.msra.mxu0 %v255_v5 }
  0x14   :  { %241 = vmatprep.subr.bf16.mxu0 %v256_v6 }
  0x17   :  { %242 = vmatpush3.bf16.msra.mxu0 %v256_v6 }
  0x18   :  { %243 = vmatprep.subr.bf16.mxu0 %v257_v7 }
  0x1b   :  { %244 = vmatpush3.bf16.msra.mxu0 %v257_v7 }
  0x1c   :  { %245 = vmatprep.subr.bf16.mxu0 %v258_v8 }
  0x1f   :  { %246 = vmatpush3.bf16.msra.mxu0 %v258_v8 }
  0x22   :  { %248 = vmatmul.mubr.bf16.vlgmr.msra.gmra.mrb[0].mxu0 %v260_v9 }
  0xf5   :  { %v249_v10 = vpop.f32.mrb[0].mxu0 }
  0xf6   :  { %172 = vst [vmem:[%s328_s2 + $0x10] sm:$0xff] %v249_v10  ;;  %v140_v11 = vpop.f32.mrb[1].mxu0  ;;  %v185_v17 = vmul.f32 %v249_v10, %v249_v10 }
  0xf7   :  { %170 = vst [vmem:[%s328_s2] sm:$0xff] %v140_v11  ;;  %v250_v12 = vpop.f32.mrb[2].mxu0  ;;  %v183_v14 = vmul.f32 %v140_v11, %v140_v11 }
  0xf8   :  { %173 = vst [vmem:[%s328_s2 + $0x18] sm:$0xff] %v250_v12  ;;  %v143_v13 = vpop.f32.mrb[3].mxu0  ;;  %v186_v20 = vmul.f32 %v250_v12, %v250_v12 }
  0xf9   :  { %171 = vst [vmem:[%s328_s2 + $0x8] sm:$0xff] %v143_v13  ;;  %v174_v15 = vadd.f32 %v143_v13, %v140_v11  ;;  %v184_v16 = vmul.f32 %v143_v13, %v143_v13 }
  0xfb   :  { %v175_v18 = vadd.f32 %v249_v10, %v174_v15  ;;  %v187_v19 = vadd.f32 %v184_v16, %v183_v14 }
  0xfd   :  { %v176_v21 = vadd.f32 %v250_v12, %v175_v18  ;;  %v188_v22 = vadd.f32 %v187_v19, %v185_v17 }
  0xff   :  { %v177_v23 = vrot.slane %v176_v21, 4  ;;  %v189_v24 = vadd.f32 %v188_v22, %v186_v20 }
 0x101   :  { %v178_v25 = vadd.f32 %v177_v23, %v176_v21  ;;  %v190_v26 = vrot.slane %v189_v24, 4 }
 0x103   :  { %v179_v28 = vrot.slane %v178_v25, 2  ;;  %v191_v29 = vadd.f32 %v190_v26, %v189_v24 }
 0x105   :  { %v180_v30 = vadd.f32 %v179_v28, %v178_v25  ;;  %v192_v31 = vrot.slane %v191_v29, 2 }
 0x107   :  { %v193_v33 = vadd.f32 %v192_v31, %v191_v29  ;;  %v181_v34 = vrot.slane %v180_v30, 1 }
 0x109   :  { %v194_v35 = vrot.slane %v193_v33, 1  ;;  %v182_v37 = vadd.f32 %v181_v34, %v180_v30 }
 0x10b   :  { %v195_v36 = vadd.f32 %v194_v35, %v193_v33 }
 0x10d   :  { %v200_v38 = vsel %vm199_vm0, %v195_v36, 0.0 }
 0x10e   :  { %v201_v39 = vsel %vm198_vm1, %v182_v37, %v200_v38 }
 0x10f   :  { %202 = vst [vmem:[%s329_s3] sm:$0xff] %v201_v39 }

// kernel: fpn_encoder_forward.18
= control target key start
LH: loop header
LB: loop body
LE: loop exit
PB: predicated region body
PF: predicated region fallthrough
CT: control target
= control target key end

     0   :  { %v268_v45 = vlaneseq  ;;  %s464_s1 = inlined_call_operand.vmem [shape: bf16[256,128], index: 1, kind: input, shape index: {}]   ;;  %s465_s0 = inlined_call_operand.vmem [shape: bf16[32,256], index: 0, kind: input, shape index: {}]   ;;  %s466_s2 = inlined_call_operand.vmem [shape: f32[32,128], index: 2, kind: output, shape index: {0}]   ;;  %s467_s3 = inlined_call_operand.vmem [shape: f32[1,8,128], index: 3, kind: output, shape index: {1}]  }
   0x1   :  { %v347_v0 = vld [vmem:[%s464_s1 + $0x40] sm:$0xff]   ;;  %v349_v2 = vld [vmem:[%s464_s1 + $0x48] sm:$0xff]   ;;  %v351_v4 = vld [vmem:[%s464_s1 + $0x50] sm:$0xff]  }
   0x2   :  { %v348_v1 = vld [vmem:[%s464_s1] sm:$0xff]   ;;  %303 = vmatprep.subr.bf16.mxu0 %v347_v0  ;;  %331 = vmatprep.subr.bf16.mxu1 %v347_v0  ;;  %v350_v3 = vld [vmem:[%s464_s1 + $0x8] sm:$0xff]   ;;  %v352_v5 = vld [vmem:[%s464_s1 + $0x10] sm:$0xff]   ;;  %v269_v50 = vshrl.u32 %v268_v45, 7 }
   0x3   :  { %304 = vmatpush3.bf16.msra.mxu0 %v348_v1  ;;  %339 = vmatpush3.bf16.msra.mxu1 %v348_v1  ;;  %v353_v6 = vld [vmem:[%s464_s1 + $0x58] sm:$0xff]   ;;  %v355_v8 = vld [vmem:[%s464_s1 + $0x60] sm:$0xff]   ;;  %v357_v10 = vld [vmem:[%s464_s1 + $0x68] sm:$0xff]  }
   0x4   :  { %305 = vmatprep.subr.bf16.mxu0 %v349_v2  ;;  %332 = vmatprep.subr.bf16.mxu1 %v349_v2  ;;  %v354_v7 = vld [vmem:[%s464_s1 + $0x18] sm:$0xff]   ;;  %v356_v9 = vld [vmem:[%s464_s1 + $0x20] sm:$0xff]   ;;  %v358_v13 = vld [vmem:[%s464_s1 + $0x28] sm:$0xff]   ;;  %vm271_vm0 = vcmp.eq.s32.totalorder %v269_v50, 1  ;;  %vm270_vm1 = vcmp.eq.s32.totalorder %v269_v50, 0 }
   0x5   :  { %v365_v11 = vld [vmem:[%s465_s0 + $0x4] ss:$8 sps:$4 sm:$0xff]   ;;  %v368_v12 = vld [vmem:[%s465_s0 + $0x14] ss:$8 sps:$4 sm:$0xff]   ;;  %v363_v18 = vld [vmem:[%s465_s0] ss:$8 sps:$4 sm:$0xff]  }
   0x6   :  { %v359_v14 = vld [vmem:[%s464_s1 + $0x70] sm:$0xff]   ;;  %210 = vmatprep.mubr.bf16.mxu0 %v365_v11  ;;  %218 = vmatprep.mubr.bf16.mxu1 %v368_v12  ;;  %v361_v16 = vld [vmem:[%s464_s1 + $0x78] sm:$0xff]  }
   0x7   :  { %306 = vmatpush3.bf16.msra.mxu0 %v350_v3  ;;  %340 = vmatpush3.bf16.msra.mxu1 %v350_v3  ;;  %v360_v15 = vld [vmem:[%s464_s1 + $0x30] sm:$0xff]   ;;  %v362_v17 = vld [vmem:[%s464_s1 + $0x38] sm:$0xff]  }
   0x8   :  { %307 = vmatprep.subr.bf16.mxu0 %v351_v4  ;;  %333 = vmatprep.subr.bf16.mxu1 %v351_v4  ;;  %v366_v19 = vld [vmem:[%s465_s0 + $0x10] ss:$8 sps:$4 sm:$0xff]  }
   0xb   :  { %308 = vmatpush3.bf16.msra.mxu0 %v352_v5  ;;  %341 = vmatpush3.bf16.msra.mxu1 %v352_v5 }
   0xc   :  { %309 = vmatprep.subr.bf16.mxu0 %v353_v6  ;;  %334 = vmatprep.subr.bf16.mxu1 %v353_v6 }
   0xf   :  { %310 = vmatpush3.bf16.msra.mxu0 %v354_v7  ;;  %342 = vmatpush3.bf16.msra.mxu1 %v354_v7 }
  0x10   :  { %311 = vmatprep.subr.bf16.mxu0 %v355_v8  ;;  %335 = vmatprep.subr.bf16.mxu1 %v355_v8 }
  0x13   :  { %312 = vmatpush3.bf16.msra.mxu0 %v356_v9  ;;  %343 = vmatpush3.bf16.msra.mxu1 %v356_v9 }
  0x14   :  { %313 = vmatprep.subr.bf16.mxu0 %v357_v10  ;;  %336 = vmatprep.subr.bf16.mxu1 %v357_v10 }
  0x17   :  { %314 = vmatpush3.bf16.msra.mxu0 %v358_v13  ;;  %344 = vmatpush3.bf16.msra.mxu1 %v358_v13 }
  0x18   :  { %315 = vmatprep.subr.bf16.mxu0 %v359_v14  ;;  %337 = vmatprep.subr.bf16.mxu1 %v359_v14 }
  0x1b   :  { %316 = vmatpush3.bf16.msra.mxu0 %v360_v15  ;;  %345 = vmatpush3.bf16.msra.mxu1 %v360_v15 }
  0x1c   :  { %317 = vmatprep.subr.bf16.mxu0 %v361_v16  ;;  %338 = vmatprep.subr.bf16.mxu1 %v361_v16 }
  0x1f   :  { %318 = vmatpush3.bf16.msra.mxu0 %v362_v17  ;;  %346 = vmatpush3.bf16.msra.mxu1 %v362_v17 }
  0x22   :  { %211 = vmatmul.mubr.bf16.vlgmr.msra.gmra.mrb[0].mxu0 %v363_v18  ;;  %219 = vmatmul.mubr.bf16.vlgmr.msra.gmra.mrb[0].mxu1 %v366_v19 }
  0xf5   :  { %v319_v20 = vpop.f32.mrb[0].mxu0  ;;  %v325_v21 = vpop.f32.mrb[0].mxu1 }
  0xf6   :  { %v320_v22 = vpop.f32.mrb[1].mxu0  ;;  %v326_v23 = vpop.f32.mrb[1].mxu1 }
  0xf7   :  { %v321_v24 = vadd.f32 %v320_v22, %v319_v20  ;;  %v322_v25 = vpop.f32.mrb[2].mxu0  ;;  %v327_v26 = vadd.f32 %v326_v23, %v325_v21  ;;  %v328_v27 = vpop.f32.mrb[2].mxu1 }
  0xf8   :  { %v323_v28 = vpop.f32.mrb[3].mxu0  ;;  %v329_v29 = vpop.f32.mrb[3].mxu1 }
  0xf9   :  { %242 = vst [vmem:[%s466_s2] sm:$0xff] %v321_v24  ;;  %244 = vst [vmem:[%s466_s2 + $0x10] sm:$0xff] %v327_v26  ;;  %v324_v30 = vadd.f32 %v323_v28, %v322_v25  ;;  %v330_v31 = vadd.f32 %v329_v29, %v328_v27  ;;  %v255_v32 = vmul.f32 %v321_v24, %v321_v24 }
  0xfa   :  { %v257_v33 = vmul.f32 %v327_v26, %v327_v26 }
  0xfb   :  { %243 = vst [vmem:[%s466_s2 + $0x8] sm:$0xff] %v324_v30  ;;  %v246_v34 = vadd.f32 %v324_v30, %v321_v24  ;;  %v256_v35 = vmul.f32 %v324_v30, %v324_v30  ;;  %245 = vst [vmem:[%s466_s2 + $0x18] sm:$0xff] %v330_v31  ;;  %v258_v39 = vmul.f32 %v330_v31, %v330_v31 }
  0xfd   :  { %v259_v36 = vadd.f32 %v256_v35, %v255_v32  ;;  %v247_v37 = vadd.f32 %v327_v26, %v246_v34 }
  0xff   :  { %v248_v38 = vadd.f32 %v330_v31, %v247_v37  ;;  %v260_v40 = vadd.f32 %v259_v36, %v257_v33 }
 0x101   :  { %v249_v41 = vrot.slane %v248_v38, 4  ;;  %v261_v42 = vadd.f32 %v260_v40, %v258_v39 }
 0x103   :  { %v250_v43 = vadd.f32 %v249_v41, %v248_v38  ;;  %v262_v44 = vrot.slane %v261_v42, 4 }
 0x105   :  { %v251_v46 = vrot.slane %v250_v43, 2  ;;  %v263_v47 = vadd.f32 %v262_v44, %v261_v42 }
 0x107   :  { %v252_v48 = vadd.f32 %v251_v46, %v250_v43  ;;  %v264_v49 = vrot.slane %v263_v47, 2 }
 0x109   :  { %v265_v51 = vadd.f32 %v264_v49, %v263_v47  ;;  %v253_v52 = vrot.slane %v252_v48, 1 }
 0x10b   :  { %v266_v53 = vrot.slane %v265_v51, 1  ;;  %v254_v55 = vadd.f32 %v253_v52, %v252_v48 }
 0x10d   :  { %v267_v54 = vadd.f32 %v266_v53, %v265_v51 }
 0x10f   :  { %v272_v56 = vsel %vm271_vm0, %v267_v54, 0.0 }
 0x110   :  { %v273_v57 = vsel %vm270_vm1, %v254_v55, %v272_v56 }
 0x111   :  { %274 = vst [vmem:[%s467_s3] sm:$0xff] %v273_v57 }

// kernel: fpn_encoder_forward.20
= control target key start
LH: loop header
LB: loop body
LE: loop exit
PB: predicated region body
PF: predicated region fallthrough
CT: control target
= control target key end

     0   :  { %v216_v28 = vlaneseq  ;;  %s366_s1 = inlined_call_operand.vmem [shape: bf16[256,128], index: 1, kind: input, shape index: {}]   ;;  %s367_s0 = inlined_call_operand.vmem [shape: bf16[8,256], index: 0, kind: input, shape index: {}]   ;;  %s368_s2 = inlined_call_operand.vmem [shape: f32[8,128], index: 2, kind: output, shape index: {0}]   ;;  %s369_s3 = inlined_call_operand.vmem [shape: f32[1,8,128], index: 3, kind: output, shape index: {1}]  }
   0x1   :  { %v271_v0 = vld [vmem:[%s366_s1 + $0x40] sm:$0xff]   ;;  %v273_v2 = vld [vmem:[%s366_s1 + $0x48] sm:$0xff]   ;;  %v275_v4 = vld [vmem:[%s366_s1 + $0x50] sm:$0xff]  }
   0x2   :  { %v272_v1 = vld [vmem:[%s366_s1] sm:$0xff]   ;;  %249 = vmatprep.subr.bf16.mxu0 %v271_v0  ;;  %v274_v3 = vld [vmem:[%s366_s1 + $0x8] sm:$0xff]   ;;  %v276_v5 = vld [vmem:[%s366_s1 + $0x10] sm:$0xff]   ;;  %v217_v33 = vshrl.u32 %v216_v28, 7 }
   0x3   :  { %250 = vmatpush3.bf16.msra.mxu0 %v272_v1  ;;  %v277_v6 = vld [vmem:[%s366_s1 + $0x58] sm:$0xff]   ;;  %v279_v8 = vld [vmem:[%s366_s1 + $0x60] sm:$0xff]   ;;  %v281_v10 = vld [vmem:[%s366_s1 + $0x68] sm:$0xff]  }
   0x4   :  { %251 = vmatprep.subr.bf16.mxu0 %v273_v2  ;;  %v278_v7 = vld [vmem:[%s366_s1 + $0x18] sm:$0xff]   ;;  %v280_v9 = vld [vmem:[%s366_s1 + $0x20] sm:$0xff]   ;;  %v282_v13 = vld [vmem:[%s366_s1 + $0x28] sm:$0xff]   ;;  %vm219_vm0 = vcmp.eq.s32.totalorder %v217_v33, 1  ;;  %vm218_vm1 = vcmp.eq.s32.totalorder %v217_v33, 0 }
   0x5   :  { %v20_v11 = vld [vmem:[%s367_s0] sm:$0xff]  ;;  %v283_v14 = vld [vmem:[%s366_s1 + $0x70] sm:$0xff]   ;;  %v285_v16 = vld [vmem:[%s366_s1 + $0x78] sm:$0xff]  }
   0x6   :  { %v232_v12 = vcombine.high %v20_v11, %v20_v11  ;;  %v284_v15 = vld [vmem:[%s366_s1 + $0x30] sm:$0xff]   ;;  %v286_v17 = vld [vmem:[%s366_s1 + $0x38] sm:$0xff]   ;;  %v231_v18 = vcombine.low %v20_v11, %v20_v11 }
   0x7   :  { %252 = vmatpush3.bf16.msra.mxu0 %v274_v3 }
   0x8   :  { %253 = vmatprep.subr.bf16.mxu0 %v275_v4  ;;  %188 = vmatprep.mubr.bf16.mxu0 %v232_v12 }
   0xb   :  { %254 = vmatpush3.bf16.msra.mxu0 %v276_v5 }
   0xc   :  { %255 = vmatprep.subr.bf16.mxu0 %v277_v6 }
   0xf   :  { %256 = vmatpush3.bf16.msra.mxu0 %v278_v7 }
  0x10   :  { %257 = vmatprep.subr.bf16.mxu0 %v279_v8 }
  0x13   :  { %258 = vmatpush3.bf16.msra.mxu0 %v280_v9 }
  0x14   :  { %259 = vmatprep.subr.bf16.mxu0 %v281_v10 }
  0x17   :  { %260 = vmatpush3.bf16.msra.mxu0 %v282_v13 }
  0x18   :  { %261 = vmatprep.subr.bf16.mxu0 %v283_v14 }
  0x1b   :  { %262 = vmatpush3.bf16.msra.mxu0 %v284_v15 }
  0x1c   :  { %263 = vmatprep.subr.bf16.mxu0 %v285_v16 }
  0x1f   :  { %264 = vmatpush3.bf16.msra.mxu0 %v286_v17 }
  0x22   :  { %189 = vmatmul.mubr.bf16.vlgmr.msra.gmra.mrb[0].mxu0 %v231_v18 }
  0xf5   :  { %v265_v19 = vpop.f32.mrb[0].mxu0 }
  0xf6   :  { %v266_v20 = vpop.f32.mrb[1].mxu0 }
  0xf7   :  { %v267_v21 = vadd.f32 %v266_v20, %v265_v19  ;;  %v268_v22 = vpop.f32.mrb[2].mxu0 }
  0xf8   :  { %v269_v23 = vpop.f32.mrb[3].mxu0 }
  0xf9   :  { %202 = vst [vmem:[%s368_s2] sm:$0xff] %v267_v21  ;;  %v203_v24 = vrot.slane %v267_v21, 4  ;;  %v209_v25 = vmul.f32 %v267_v21, %v267_v21 }
  0xfb   :  { %v204_v26 = vadd.f32 %v267_v21, %v203_v24  ;;  %v210_v27 = vrot.slane %v209_v25, 4 }
  0xfd   :  { %v205_v29 = vrot.slane %v204_v26, 2  ;;  %v211_v30 = vadd.f32 %v210_v27, %v209_v25 }
  0xff   :  { %v206_v31 = vadd.f32 %v205_v29, %v204_v26  ;;  %v212_v32 = vrot.slane %v211_v30, 2 }
 0x101   :  { %v213_v34 = vadd.f32 %v212_v32, %v211_v30  ;;  %v207_v35 = vrot.slane %v206_v31, 1 }
 0x103   :  { %v214_v36 = vrot.slane %v213_v34, 1  ;;  %v208_v38 = vadd.f32 %v207_v35, %v206_v31 }
 0x105   :  { %v215_v37 = vadd.f32 %v214_v36, %v213_v34 }
 0x107   :  { %v220_v39 = vsel %vm219_vm0, %v215_v37, 0.0 }
 0x108   :  { %v221_v40 = vsel %vm218_vm1, %v208_v38, %v220_v39 }
 0x109   :  { %222 = vst [vmem:[%s369_s3] sm:$0xff] %v221_v40 }

// kernel: fpn_encoder_forward.21
= control target key start
LH: loop header
LB: loop body
LE: loop exit
PB: predicated region body
PF: predicated region fallthrough
CT: control target
= control target key end

     0   :  { %s71_s0 = inlined_call_operand.vmem [shape: f32[8,128], index: 0, kind: input, shape index: {}]   ;;  %s72_s1 = inlined_call_operand.vmem [shape: f32[1,128], index: 1, kind: input, shape index: {}]   ;;  %s73_s2 = inlined_call_operand.vmem [shape: f32[1,128], index: 2, kind: input, shape index: {}]   ;;  %s74_s3 = inlined_call_operand.vmem [shape: f32[8,128], index: 3, kind: output, shape index: {}]  }
   0x1   :  { %v14_v0 = vld [vmem:[%s71_s0] sm:$0xff] }
   0x2   :  { %v37_v1 = vld [vmem:[%s72_s1] ss:$0 sm:$0xff] }
   0x3   :  { %v38_v2 = vld [vmem:[%s73_s2] ss:$0 sm:$0xff]  ;;  %v22_v3 = vmul.f32 %v37_v1, %v14_v0 }
   0x5   :  { %v30_v4 = vadd.f32 %v38_v2, %v22_v3 }
   0x7   :  { %v31_v5 = vmax.f32 %v30_v4, 0.0 }
   0x9   :  { %32 = vst [vmem:[%s74_s3] sm:$0xff] %v31_v5 }

// kernel: fpn_encoder_forward.22
= control target key start
LH: loop header
LB: loop body
LE: loop exit
PB: predicated region body
PF: predicated region fallthrough
CT: control target
= control target key end

     0   :  { %v447_v1 = vmov 0.0   ;;  %vm448_vm0 = vmmov 0   ;;  %v325_v43 = vlaneseq  ;;  %s553_s1 = inlined_call_operand.vmem [shape: bf16[384,128], index: 1, kind: input, shape index: {}]   ;;  %s554_s0 = inlined_call_operand.vmem [shape: bf16[8,384], index: 0, kind: input, shape index: {}]   ;;  %s555_s2 = inlined_call_operand.vmem [shape: f32[8,128], index: 2, kind: output, shape index: {0}]   ;;  %s556_s3 = inlined_call_operand.vmem [shape: f32[1,8,128], index: 3, kind: output, shape index: {1}]  }
   0x1   :  { %v420_v0 = vld [vmem:[%s553_s1 + $0x40] sm:$0xff]   ;;  %398 = vmatprep.subr.bf16.mxu1 %v447_v1  ;;  %414 = vmatprep.mubr.msk.bf16.mxu1 %vm448_vm0, %v447_v1  ;;  %v423_v4 = vld [vmem:[%s553_s1 + $0x48] sm:$0xff]   ;;  %v426_v7 = vld [vmem:[%s553_s1 + $0x50] sm:$0xff]  }
   0x2   :  { %v421_v2 = vld [vmem:[%s553_s1] sm:$0xff]   ;;  %367 = vmatprep.subr.bf16.mxu0 %v420_v0  ;;  %v424_v5 = vld [vmem:[%s553_s1 + $0x8] sm:$0xff]   ;;  %v427_v8 = vld [vmem:[%s553_s1 + $0x10] sm:$0xff]   ;;  %v326_v48 = vshrl.u32 %v325_v43, 7 }
   0x3   :  { %v422_v3 = vld [vmem:[%s553_s1 + $0x80] sm:$0xff]   ;;  %368 = vmatpush3.bf16.msra.mxu0 %v421_v2  ;;  %v425_v6 = vld [vmem:[%s553_s1 + $0x88] sm:$0xff]   ;;  %v428_v9 = vld [vmem:[%s553_s1 + $0x90] sm:$0xff]  }
   0x4   :  { %399 = vmatpush3.bf16.msra.mxu1 %v422_v3  ;;  %369 = vmatprep.subr.bf16.mxu0 %v423_v4  ;;  %v429_v10 = vld [vmem:[%s553_s1 + $0x58] sm:$0xff]   ;;  %v432_v13 = vld [vmem:[%s553_s1 + $0x60] sm:$0xff]   ;;  %v435_v16 = vld [vmem:[%s553_s1 + $0x68] sm:$0xff]   ;;  %vm328_vm1 = vcmp.eq.s32.totalorder %v326_v48, 1  ;;  %vm327_vm2 = vcmp.eq.s32.totalorder %v326_v48, 0 }
   0x5   :  { %400 = vmatprep.subr.bf16.mxu1 %v447_v1  ;;  %v430_v11 = vld [vmem:[%s553_s1 + $0x18] sm:$0xff]   ;;  %v433_v14 = vld [vmem:[%s553_s1 + $0x20] sm:$0xff]   ;;  %v436_v17 = vld [vmem:[%s553_s1 + $0x28] sm:$0xff]  }
   0x6   :  { %v431_v12 = vld [vmem:[%s553_s1 + $0x98] sm:$0xff]   ;;  %v434_v15 = vld [vmem:[%s553_s1 + $0xa0] sm:$0xff]   ;;  %v437_v18 = vld [vmem:[%s553_s1 + $0xa8] sm:$0xff]  }
   0x7   :  { %370 = vmatpush3.bf16.msra.mxu0 %v424_v5  ;;  %v438_v19 = vld [vmem:[%s553_s1 + $0x70] sm:$0xff]   ;;  %v441_v22 = vld [vmem:[%s553_s1 + $0x78] sm:$0xff]   ;;  %v20_v23 = vld [vmem:[%s554_s0] sm:$0xff] }
   0x8   :  { %401 = vmatpush3.bf16.msra.mxu1 %v425_v6  ;;  %371 = vmatprep.subr.bf16.mxu0 %v426_v7  ;;  %v439_v20 = vld [vmem:[%s553_s1 + $0x30] sm:$0xff]   ;;  %v341_v24 = vcombine.high %v20_v23, %v20_v23  ;;  %v442_v25 = vld [vmem:[%s553_s1 + $0x38] sm:$0xff]   ;;  %v340_v27 = vcombine.low %v20_v23, %v20_v23  ;;  %v446_v28 = vld [vmem:[%s554_s0 + $0x8] ss:$0 sps:$4 sm:$0xff]  }
   0x9   :  { %402 = vmatprep.subr.bf16.mxu1 %v447_v1  ;;  %v440_v21 = vld [vmem:[%s553_s1 + $0xb0] sm:$0xff]   ;;  %v443_v26 = vld [vmem:[%s553_s1 + $0xb8] sm:$0xff]  }
   0xa   :  { %257 = vmatprep.mubr.bf16.mxu0 %v341_v24 }
   0xb   :  { %372 = vmatpush3.bf16.msra.mxu0 %v427_v8 }
   0xc   :  { %403 = vmatpush3.bf16.msra.mxu1 %v428_v9  ;;  %373 = vmatprep.subr.bf16.mxu0 %v429_v10 }
   0xd   :  { %404 = vmatprep.subr.bf16.mxu1 %v447_v1 }
   0xf   :  { %374 = vmatpush3.bf16.msra.mxu0 %v430_v11 }
  0x10   :  { %405 = vmatpush3.bf16.msra.mxu1 %v431_v12  ;;  %375 = vmatprep.subr.bf16.mxu0 %v432_v13 }
  0x11   :  { %406 = vmatprep.subr.bf16.mxu1 %v447_v1 }
  0x13   :  { %376 = vmatpush3.bf16.msra.mxu0 %v433_v14 }
  0x14   :  { %407 = vmatpush3.bf16.msra.mxu1 %v434_v15  ;;  %377 = vmatprep.subr.bf16.mxu0 %v435_v16 }
  0x15   :  { %408 = vmatprep.subr.bf16.mxu1 %v447_v1 }
  0x17   :  { %378 = vmatpush3.bf16.msra.mxu0 %v436_v17 }
  0x18   :  { %409 = vmatpush3.bf16.msra.mxu1 %v437_v18  ;;  %379 = vmatprep.subr.bf16.mxu0 %v438_v19 }
  0x19   :  { %410 = vmatprep.subr.bf16.mxu1 %v447_v1 }
  0x1b   :  { %380 = vmatpush3.bf16.msra.mxu0 %v439_v20 }
  0x1c   :  { %411 = vmatpush3.bf16.msra.mxu1 %v440_v21  ;;  %381 = vmatprep.subr.bf16.mxu0 %v441_v22 }
  0x1d   :  { %412 = vmatprep.subr.bf16.mxu1 %v447_v1 }
  0x1f   :  { %382 = vmatpush3.bf16.msra.mxu0 %v442_v25 }
  0x20   :  { %413 = vmatpush3.bf16.msra.mxu1 %v443_v26 }
  0x22   :  { %258 = vmatmul.mubr.bf16.vlgmr.msra.gmra.mrb[0].mxu0 %v340_v27 }
  0x23   :  { %415 = vmatmul.mubr.bf16.vlgmr.msra.gmra.mrb[0].mxu1 %v446_v28 }
  0xf5   :  { %v383_v29 = vpop.f32.mrb[0].mxu0 }
  0xf6   :  { %v299_v30 = vpop.f32.mrb[0].mxu1  ;;  %v384_v31 = vpop.f32.mrb[1].mxu0 }
  0xf7   :  { %v385_v32 = vadd.f32 %v384_v31, %v383_v29  ;;  %v416_v33 = vpop.f32.mrb[1].mxu1  ;;  %v386_v34 = vpop.f32.mrb[2].mxu0 }
  0xf8   :  { %v302_v35 = vpop.f32.mrb[2].mxu1  ;;  %v387_v36 = vpop.f32.mrb[3].mxu0 }
  0xf9   :  { %v300_v37 = vadd.f32 %v385_v32, %v299_v30  ;;  %v417_v38 = vpop.f32.mrb[3].mxu1 }
  0xfb   :  { %311 = vst [vmem:[%s555_s2] sm:$0xff] %v300_v37  ;;  %v312_v39 = vrot.slane %v300_v37, 4  ;;  %v318_v40 = vmul.f32 %v300_v37, %v300_v37 }
  0xfd   :  { %v313_v41 = vadd.f32 %v312_v39, %v300_v37  ;;  %v319_v42 = vrot.slane %v318_v40, 4 }
  0xff   :  { %v314_v44 = vrot.slane %v313_v41, 2  ;;  %v320_v45 = vadd.f32 %v319_v42, %v318_v40 }
 0x101   :  { %v315_v46 = vadd.f32 %v314_v44, %v313_v41  ;;  %v321_v47 = vrot.slane %v320_v45, 2 }
 0x103   :  { %v322_v49 = vadd.f32 %v321_v47, %v320_v45  ;;  %v316_v50 = vrot.slane %v315_v46, 1 }
 0x105   :  { %v323_v51 = vrot.slane %v322_v49, 1  ;;  %v317_v53 = vadd.f32 %v316_v50, %v315_v46 }
 0x107   :  { %v324_v52 = vadd.f32 %v323_v51, %v322_v49 }
 0x109   :  { %v329_v54 = vsel %vm328_vm1, %v324_v52, 0.0 }
 0x10a   :  { %v330_v55 = vsel %vm327_vm2, %v317_v53, %v329_v54 }
 0x10b   :  { %331 = vst [vmem:[%s556_s3] sm:$0xff] %v330_v55 }

// kernel: fpn_encoder_forward.23
= control target key start
LH: loop header
LB: loop body
LE: loop exit
PB: predicated region body
PF: predicated region fallthrough
CT: control target
= control target key end

     0   :  { %s117_s0 = inlined_call_operand.vmem [shape: f32[8,128], index: 0, kind: input, shape index: {}]   ;;  %s118_s1 = inlined_call_operand.vmem [shape: f32[1,128], index: 1, kind: input, shape index: {}]   ;;  %s119_s2 = inlined_call_operand.vmem [shape: f32[1,128], index: 2, kind: input, shape index: {}]   ;;  %s120_s3 = inlined_call_operand.hbm [shape: f32[8,128], index: 3, kind: output, shape index: {}]  }
   0x1   :  { %v15_v0 = vld [vmem:[%s117_s0] sm:$0xff] }
   0x2   :  { %v48_v1 = vld [vmem:[%s118_s1] ss:$0 sm:$0xff] }
   0x3   :  { %v49_v2 = vld [vmem:[%s119_s2] ss:$0 sm:$0xff]  ;;  %v23_v3 = vmul.f32 %v48_v1, %v15_v0 }
   0x4   :  { %8 = vsyncpa [#allocation3], 0  ;;  %s75_s18 = smov [#allocation2]  }
   0x5   :  { %s40_s19 = sshll.u32 %s75_s18, 4  ;;  %v31_v4 = vadd.f32 %v49_v2, %v23_v3  ;;  %s41_s19 = int_to_ptr.vmem [resolvable:$true] %s40_s19 }
   0x6   :  { %s51_s20 = scalar_lea.vmem %s41_s19, 128  ;;  %p56_p1 = scmp.lt.s32.totalorder %s41_s19, %s41_s19 }
   0x7   :  { %v32_v5 = vmax.f32 %v31_v4, 0.0  ;;  %p52_p0 = scmp.ne.s32.totalorder %s41_s19, %s51_s20  ;;  %p57_p2 = scmp.lt.s32.totalorder %s51_s20, %s51_s20 }
   0x9   :  { %33 = vst [vmem:[#allocation2] sm:$0xff] %v32_v5  ;;  %p58_p3 = por %p57_p2, %p56_p1 }
   0xb   :  { %p59_p4 = pnand %p58_p3, %p52_p0 }
   0xd   :  { %62 = shalt.err (!%p59_p4)
}
   0xe   :  { %s63_s21 = scalar_lea.hbm %s120_s3, 128 }
   0xf   :  { %p64_p5 = scmp.ne.s32.totalorder %s120_s3, %s63_s21  ;;  %p67_p6 = scmp.lt.u32.totalorder %s63_s21, %s120_s3 }
  0x11   :  { %p69_p7 = pnand %p67_p6, %p64_p5 }
  0x13   :  { %72 = shalt.err (!%p69_p7)
}
  0x14   :  { %43 = dma.vmem_to_hbm [thread:$0]  %s41_s19, 128, %s120_s3, [#allocation3]  }
  0x15   :  { %73 = dma.done.wait [#allocation3], 128  }
  0x16   :  { %74 = vsyncadd [#allocation3], 4294967168 }
  0x17   :  { %47 = vsyncpa [#allocation3], 1 }

</bundles_post_ra>
